<compile_context>
chip_gen: v7x
topology: tpu7x:2x2x1
jax: 0.10.0
libtpu: 0.0.40
codegen_flags: <defaults>
</compile_context>

<pallas_src>
import functools
import numpy as np
import jax
import jax.numpy as jnp
from jax import lax
from jax.experimental import pallas as pl
from jax.experimental.pallas import tpu as pltpu

BACKGROUND_LABEL = 0.0
FOREGROUND_LABEL = 1.0
IGNORE_LABEL = 2.0
POSITIVE_IOU_THRESHOLD = 0.7
NEGATIVE_IOU_THRESHOLD = 0.3
BATCH_SIZE = 256
FG_FRACTION = 0.5

_GT_BUCKETS = (4, 8, 16, 32, 64, 128)   # pad G to a bucket -> no per-G recompiles
_GT_MAX_SENTINEL = -2.0                 # never equals a masked IoU (those are >= 0 or exactly -1)


def _round_up(x, m):
    return ((x + m - 1) // m) * m


# ----------------------- anchor generation (host, cached per config) -----------------------
def _whctrs(anchor):
    w = anchor[2] - anchor[0] + 1
    h = anchor[3] - anchor[1] + 1
    x_ctr = anchor[0] + 0.5 * (w - 1)
    y_ctr = anchor[1] + 0.5 * (h - 1)
    return w, h, x_ctr, y_ctr


def _mkanchors(ws, hs, x_ctr, y_ctr):
    ws = ws[:, np.newaxis]
    hs = hs[:, np.newaxis]
    return np.hstack((x_ctr - 0.5 * (ws - 1), y_ctr - 0.5 * (hs - 1),
                      x_ctr + 0.5 * (ws - 1), y_ctr + 0.5 * (hs - 1)))


def _ratio_enum(anchor, ratios):
    w, h, x_ctr, y_ctr = _whctrs(anchor)
    size = w * h
    size_ratios = size / ratios
    ws = np.round(np.sqrt(size_ratios))
    hs = np.round(ws * ratios)
    return _mkanchors(ws, hs, x_ctr, y_ctr)


def _scale_enum(anchor, scales):
    w, h, x_ctr, y_ctr = _whctrs(anchor)
    ws = w * scales
    hs = h * scales
    return _mkanchors(ws, hs, x_ctr, y_ctr)


def generate_anchors(base_size=16, ratios=np.array([0.5, 1, 2]),
                     scales=2 ** np.arange(3, 6)):
    base_anchor = np.array([1, 1, base_size, base_size], dtype=np.float64) - 1
    ratio_anchors = _ratio_enum(base_anchor, ratios)
    return np.vstack([_scale_enum(ratio_anchors[i, :], scales)
                      for i in range(ratio_anchors.shape[0])])


def _get_all_anchors(base_anchors, width, height, stride):
    shift_x = np.arange(0, width) * stride
    shift_y = np.arange(0, height) * stride
    xs, ys = np.meshgrid(shift_x, shift_y)
    xs, ys = xs.ravel(), ys.ravel()
    shifts = np.vstack([xs, ys, xs, ys])
    shifts = shifts[np.newaxis, :].transpose(2, 0, 1)          # (H*W, 1, 4)
    A = base_anchors.shape[0]
    return (base_anchors[np.newaxis] + shifts).reshape(A * width * height, 4)


@functools.lru_cache(maxsize=None)
def _anchor_constants(width, height, stride):
    """Host-side anchor grid, built once per (width, height, stride) and kept on device."""
    base_anchors = generate_anchors(16)
    A = base_anchors.shape[0]                                  # 9 anchors per location
    all_anchors = _get_all_anchors(base_anchors, width, height, stride).astype(np.float32)
    N = all_anchors.shape[0]
    S = -(-N // 128)                                           # 128-lane rows
    T = min(256, _round_up(S, 8))                              # sublane tile per grid step
    S_pad = _round_up(S, T)
    num_tiles = S_pad // T
    # Padded anchors are (-1,-1,-1,-1): invalid (x1 < 0) degenerate 1x1 boxes, so no
    # explicit index masking is needed inside the kernels (union stays >= 1 everywhere).
    anchors_t = np.full((4, S_pad * 128), -1.0, dtype=np.float32)
    anchors_t[:, :N] = all_anchors.T
    anchors_dev = jnp.asarray(anchors_t.reshape(4, S_pad, 128))
    return A, N, S_pad, T, num_tiles, anchors_dev


# ------------------------------ shared in-kernel helpers ------------------------------
def _gt_scalars(gt_ref, j):
    return (gt_ref[4 * j + 0], gt_ref[4 * j + 1],
            gt_ref[4 * j + 2], gt_ref[4 * j + 3])


def _anchor_geometry(anchors_ref, im_ref):
    ax1 = anchors_ref[0]
    ay1 = anchors_ref[1]
    ax2 = anchors_ref[2]
    ay2 = anchors_ref[3]
    im_w = im_ref[0]
    im_h = im_ref[1]
    valid = (ax1 >= 0.0) & (ay1 >= 0.0) & (ax2 < im_w) & (ay2 < im_h)
    aw = ax2 - ax1 + 1.0
    ah = ay2 - ay1 + 1.0
    a_area = aw * ah            # anchor w,h >= 1 by construction (padded anchors are 1x1)
    return ax1, ay1, ax2, ay2, aw, ah, a_area, valid


def _iou_with_gt(ax1, ay1, ax2, ay2, a_area, gx1, gy1, gx2, gy2):
    # NOTE: phases 1 and 2 must trace the *same* ops here so their IoU values match
    # bit-for-bit (the per-GT-max foreground rule compares them with ==).
    gw = gx2 - gx1 + 1.0
    gh = gy2 - gy1 + 1.0
    g_area = jnp.where((gw > 0.0) & (gh > 0.0), gw * gh, 0.0)      # scalar (SMEM) ops
    iw = jnp.minimum(ax2, gx2) - jnp.maximum(ax1, gx1) + 1.0
    ih = jnp.minimum(ay2, gy2) - jnp.maximum(ay1, gy1) + 1.0
    inter = jnp.maximum(iw, 0.0) * jnp.maximum(ih, 0.0)
    union = a_area + g_area - inter                                 # always >= 1
    # approx reciprocal -> EUP slot; ~2^-12 relative error on IoU (acceptable vs 0.3/0.7).
    return inter * pl.reciprocal(union, approx=True)


# ------------------------------ phase 1: per-GT max IoU ------------------------------
def _gt_max_kernel(num_gt_pad, anchors_ref, gt_ref, im_ref, ng_ref, gtmax_ref):
    t = pl.program_id(0)

    @pl.when(t == 0)
    def _init():
        gtmax_ref[...] = jnp.full_like(gtmax_ref, _GT_MAX_SENTINEL)

    ax1, ay1, ax2, ay2, _, _, a_area, valid = _anchor_geometry(anchors_ref, im_ref)
    lane = lax.broadcasted_iota(jnp.int32, gtmax_ref.shape, 1)

    acc = gtmax_ref[...]
    # TODO(synk): switch to lax.fori_loop(..., unroll=8) for GT buckets > 32.
    for j in range(num_gt_pad):
        gx1, gy1, gx2, gy2 = _gt_scalars(gt_ref, j)
        iou = _iou_with_gt(ax1, ay1, ax2, ay2, a_area, gx1, gy1, gx2, gy2)
        tile_max = jnp.max(jnp.where(valid, iou, -1.0))
        acc = jnp.where(lane == j, jnp.maximum(acc, tile_max), acc)
    gtmax_ref[...] = acc

    @pl.when(t == pl.num_programs(0) - 1)
    def _finalize():
        # padded GT lanes must never match any anchor's IoU in phase 2
        gtmax_ref[...] = jnp.where(lane < ng_ref[0], gtmax_ref[...], _GT_MAX_SENTINEL)


# --------------------------- phase 2: labels + bbox targets ---------------------------
def _label_bbox_kernel(num_gt_pad, anchors_ref, gt_ref, im_ref, gtmax_ref,
                       bbox_ref, lbl_ref):
    ax1, ay1, ax2, ay2, aw, ah, a_area, valid = _anchor_geometry(anchors_ref, im_ref)
    shape = ax1.shape

    best = jnp.full(shape, -jnp.inf, jnp.float32)
    arg = jnp.zeros(shape, jnp.int32)            # running per-anchor argmax GT index
    is_gt_max = jnp.zeros(shape, jnp.bool_)

    # Unrolled over the bucketed GT count. Padded GT boxes are (-1,-1,-1,-1): IoU 0 with
    # every valid anchor and sentinel gt-max, so they never win the argmax nor flag FG.
    # TODO(synk): switch to lax.fori_loop(..., unroll=8) for GT buckets > 32.
    for j in range(num_gt_pad):
        gx1, gy1, gx2, gy2 = _gt_scalars(gt_ref, j)
        iou = _iou_with_gt(ax1, ay1, ax2, ay2, a_area, gx1, gy1, gx2, gy2)
        better = iou > best                      # first-max tie-break == np.argmax
        best = jnp.where(better, iou, best)
        arg = jnp.where(better, j, arg)
        is_gt_max = is_gt_max | (jnp.where(valid, iou, -1.0) == gtmax_ref[j])

    # materialize matched-GT stats from the argmax index (short scalar-select chain)
    mgcx = jnp.zeros(shape, jnp.float32)
    mgcy = jnp.zeros(shape, jnp.float32)
    mgw = jnp.ones(shape, jnp.float32)
    mgh = jnp.ones(shape, jnp.float32)
    for j in range(num_gt_pad):
        gx1, gy1, gx2, gy2 = _gt_scalars(gt_ref, j)
        sel = arg == j
        mgcx = jnp.where(sel, (gx1 + gx2) * 0.5, mgcx)
        mgcy = jnp.where(sel, (gy1 + gy2) * 0.5, mgcy)
        mgw = jnp.where(sel, gx2 - gx1 + 1.0, mgw)
        mgh = jnp.where(sel, gy2 - gy1 + 1.0, mgh)

    # label assignment (same order as the reference)
    label = jnp.full(shape, IGNORE_LABEL, jnp.float32)
    label = jnp.where(best < NEGATIVE_IOU_THRESHOLD, BACKGROUND_LABEL, label)
    label = jnp.where(is_gt_max, FOREGROUND_LABEL, label)
    label = jnp.where(best >= POSITIVE_IOU_THRESHOLD, FOREGROUND_LABEL, label)
    label = jnp.where(valid, label, IGNORE_LABEL)        # invalid anchors ignored

    # bbox regression targets w.r.t. the argmax GT box (EUP reciprocals, no f32 divides)
    acx = (ax2 + ax1) * 0.5
    acy = (ay2 + ay1) * 0.5
    inv_aw = pl.reciprocal(aw, approx=True)
    inv_ah = pl.reciprocal(ah, approx=True)
    dx = (mgcx - acx) * inv_aw
    dy = (mgcy - acy) * inv_ah
    dw = jnp.log(mgw * inv_aw)
    dh = jnp.log(mgh * inv_ah)

    bbox_ref[0] = jnp.where(valid, dx, 0.0)
    bbox_ref[1] = jnp.where(valid, dy, 0.0)
    bbox_ref[2] = jnp.where(valid, dw, 0.0)
    bbox_ref[3] = jnp.where(valid, dh, 0.0)
    lbl_ref[...] = label


# ------------------------------- jitted device-side core --------------------------------
@functools.partial(jax.jit,
                   static_argnames=("width", "height", "A", "N", "S_pad", "T",
                                    "num_tiles", "G_pad"))
def _anchor_data_core(anchors_dev, gt_flat, im_wh, num_gt, *,
                      width, height, A, N, S_pad, T, num_tiles, G_pad):
    smem = functools.partial(pl.BlockSpec, memory_space=pltpu.MemorySpace.SMEM)

    # ---- phase 1: per-GT max IoU over valid anchors (sequential reduction over tiles)
    gt_max = pl.pallas_call(
        functools.partial(_gt_max_kernel, G_pad),
        out_shape=jax.ShapeDtypeStruct((1, 128), jnp.float32),
        grid=(num_tiles,),
        in_specs=[pl.BlockSpec((4, T, 128), lambda t: (0, t, 0)),   # anchor slabs
                  smem(),                                           # gt boxes, flat
                  smem(),                                           # [im_w, im_h]
                  smem()],                                          # true GT count
        out_specs=pl.BlockSpec((1, 128), lambda t: (0, 0)),         # resident accumulator
        compiler_params=pltpu.CompilerParams(dimension_semantics=("arbitrary",)),
    )(anchors_dev, gt_flat, im_wh, num_gt)

    # ---- phase 2: labels + bbox targets, tile-parallel (megacore on v7x)
    bbox_out, lbl_out = pl.pallas_call(
        functools.partial(_label_bbox_kernel, G_pad),
        out_shape=(jax.ShapeDtypeStruct((4, S_pad, 128), jnp.float32),
                   jax.ShapeDtypeStruct((S_pad, 128), jnp.float32)),
        grid=(num_tiles,),
        in_specs=[pl.BlockSpec((4, T, 128), lambda t: (0, t, 0)),
                  smem(), smem(), smem()],
        out_specs=(pl.BlockSpec((4, T, 128), lambda t: (0, t, 0)),
                   pl.BlockSpec((T, 128), lambda t: (t, 0))),
        compiler_params=pltpu.CompilerParams(dimension_semantics=("parallel",)),
    )(anchors_dev, gt_flat, im_wh, gt_max.reshape(128))

    labels = lbl_out.reshape(S_pad * 128)[:N]                       # (N,)

    # fg/bg subsampling to BATCH_SIZE (128 fg / 128 bg), one fused 2-channel prefix scan.
    # TODO(synk): reference uses npr.choice (random, no replacement); deterministic
    # "keep first K in index order" used instead (same sample sizes).
    target = int(BATCH_SIZE * FG_FRACTION)
    fg = labels == FOREGROUND_LABEL
    bg = labels == BACKGROUND_LABEL
    counts = jnp.cumsum(jnp.stack([fg, bg]).astype(jnp.int32), axis=1)
    keep_fg = fg & (counts[0] <= target)
    keep_bg = bg & (counts[1] <= target)
    labels = jnp.where(keep_fg, FOREGROUND_LABEL,
                       jnp.where(keep_bg, BACKGROUND_LABEL, IGNORE_LABEL))
    num_not_ignored = (jnp.minimum(counts[0, -1], target) +
                       jnp.minimum(counts[1, -1], target)).astype(jnp.float32)

    # NCHW relayouts (coordinate axis kept leading; no (N, 4) lane-dim-4 intermediates).
    all_labels = (labels.reshape(1, height, width, A)
                        .transpose(0, 3, 1, 2)
                        .reshape(1, 1, A * height, width)
                        .astype(jnp.int32))                         # LongTensor -> int32
    bbox_cm = bbox_out.reshape(4, S_pad * 128)[:, :N]               # (4, N) coord-major
    all_bbox = (bbox_cm.reshape(4, height, width, A)
                       .transpose(3, 0, 1, 2)
                       .reshape(1, 4 * A, height, width))
    fg_ahw = keep_fg.astype(jnp.float32).reshape(height, width, A).transpose(2, 0, 1)
    all_weights = jnp.broadcast_to(fg_ahw[:, None, :, :],
                                   (A, 4, height, width)).reshape(1, 4 * A, height, width)
    norm = jnp.reshape(1.0 / num_not_ignored, (1,)).astype(jnp.float32)
    return all_labels, all_bbox, all_weights, norm


# ----------------------------------- Python wrapper ------------------------------------
def _gt_bucket(num_gt):
    for b in _GT_BUCKETS:
        if num_gt <= b:
            return b
    # TODO(synk): >128 ground-truth boxes would need a wider per-GT-max vector.
    raise ValueError("AnchorDataGenerator Pallas port supports at most 128 GT boxes")


def anchor_data_generator(width, height, ground_truth_boxes, im_w, im_h,
                          stride=16, include_cut_anchor=False):
    # TODO(synk): include_cut_anchor=True path (keep image-crossing anchors) not wired in.
    width, height, stride = int(width), int(height), int(stride)
    A, N, S_pad, T, num_tiles, anchors_dev = _anchor_constants(width, height, stride)

    gt = jnp.asarray(ground_truth_boxes, dtype=jnp.float32).reshape(-1, 4)
    G = int(gt.shape[0])
    if G < 1:
        # TODO(synk): reference behaviour with zero GT boxes is undefined (argmax on empty).
        raise ValueError("at least one ground-truth box is required")
    G_pad = _gt_bucket(G)
    if G_pad > G:                                    # pad inside the same bucket: no recompile
        gt = jnp.concatenate(
            [gt, jnp.full((G_pad - G, 4), -1.0, dtype=jnp.float32)], axis=0)
    gt_flat = gt.reshape(4 * G_pad)
    im_wh = jnp.asarray([im_w, im_h], dtype=jnp.float32)
    num_gt = jnp.asarray([G], dtype=jnp.int32)

    return _anchor_data_core(anchors_dev, gt_flat, im_wh, num_gt,
                             width=width, height=height, A=A, N=N,
                             S_pad=S_pad, T=T, num_tiles=num_tiles, G_pad=G_pad)


# ---------------------------------------- main -----------------------------------------
if __name__ == "__main__":
    # feature map 16x16, stride 16 -> 256x256 image; 3 ground-truth boxes.
    width, height = 16, 16
    stride = 16
    im_w, im_h = float(width * stride), float(height * stride)

    key = jax.random.PRNGKey(0)
    k1, k2, k3, k4 = jax.random.split(key, 4)
    G = 3
    x1 = jax.random.uniform(k1, (G,), minval=0.0, maxval=100.0)
    y1 = jax.random.uniform(k2, (G,), minval=0.0, maxval=100.0)
    bw = jax.random.uniform(k3, (G,), minval=60.0, maxval=150.0)
    bh = jax.random.uniform(k4, (G,), minval=60.0, maxval=150.0)
    gt_boxes = jnp.stack([x1, y1, x1 + bw, y1 + bh], axis=1)    # (3, 4) within the image

    labels, bbox_adj, bbox_w, norm = anchor_data_generator(
        width, height, gt_boxes, im_w, im_h, stride=stride)
    jax.block_until_ready((labels, bbox_adj, bbox_w, norm))

    # steady-state path: lru_cache'd anchors + jit cache hit
    labels, bbox_adj, bbox_w, norm = anchor_data_generator(
        width, height, gt_boxes, im_w, im_h, stride=stride)
    jax.block_until_ready((labels, bbox_adj, bbox_w, norm))

    # different GT count within the same bucket -> no recompile, exercises padded-GT lanes
    labels2, bbox_adj2, bbox_w2, norm2 = anchor_data_generator(
        width, height, gt_boxes[:2], im_w, im_h, stride=stride)
    jax.block_until_ready((labels2, bbox_adj2, bbox_w2, norm2))

    assert labels.shape == (1, 1, 9 * height, width)
    assert bbox_adj.shape == (1, 36, height, width)
    assert bbox_w.shape == (1, 36, height, width)
    assert norm.shape == (1,)
    assert bool(jnp.all((labels >= 0) & (labels <= 2)))
    assert bool(jnp.all(jnp.isfinite(bbox_adj)))
    print("KERNEL_OK")
</pallas_src>

<mosaic_0001>
module attributes {stable_mosaic.version = 11 : i64} {
  func.func @_label_bbox_kernel(%arg0: i32, %arg1: memref<4x24x128xf32, #tpu.memory_space<vmem>>, %arg2: memref<16xf32, #tpu.memory_space<smem>>, %arg3: memref<2xf32, #tpu.memory_space<smem>>, %arg4: memref<128xf32, #tpu.memory_space<smem>>, %arg5: memref<4x24x128xf32, #tpu.memory_space<vmem>>, %arg6: memref<24x128xf32, #tpu.memory_space<vmem>>) attributes {dimension_semantics = [#tpu.dimension_semantics<parallel>], iteration_bounds = array<i64: 1>, scalar_prefetch = 0 : i64, scratch_operands = 0 : i64, tpu.core_type = #tpu.core_type<tc>, window_params = [{transform_indices = @transform_0, window_bounds = array<i64: 4, 24, 128>}, {transform_indices = @transform_1, window_bounds = array<i64: 16>}, {transform_indices = @transform_2, window_bounds = array<i64: 2>}, {transform_indices = @transform_3, window_bounds = array<i64: 128>}, {transform_indices = @transform_4, window_bounds = array<i64: 4, 24, 128>}, {transform_indices = @transform_5, window_bounds = array<i64: 24, 128>}]} {
    %c0 = arith.constant 0 : index
    %c0_0 = arith.constant 0 : index
    %c0_1 = arith.constant 0 : index
    %0 = vector.load %arg1[%c0, %c0_0, %c0_1] : memref<4x24x128xf32, #tpu.memory_space<vmem>>, vector<1x24x128xf32>
    %1 = vector.shape_cast %0 : vector<1x24x128xf32> to vector<24x128xf32>
    %c1 = arith.constant 1 : index
    %c0_2 = arith.constant 0 : index
    %c0_3 = arith.constant 0 : index
    %2 = vector.load %arg1[%c1, %c0_2, %c0_3] : memref<4x24x128xf32, #tpu.memory_space<vmem>>, vector<1x24x128xf32>
    %3 = vector.shape_cast %2 : vector<1x24x128xf32> to vector<24x128xf32>
    %c2 = arith.constant 2 : index
    %c0_4 = arith.constant 0 : index
    %c0_5 = arith.constant 0 : index
    %4 = vector.load %arg1[%c2, %c0_4, %c0_5] : memref<4x24x128xf32, #tpu.memory_space<vmem>>, vector<1x24x128xf32>
    %5 = vector.shape_cast %4 : vector<1x24x128xf32> to vector<24x128xf32>
    %c3 = arith.constant 3 : index
    %c0_6 = arith.constant 0 : index
    %c0_7 = arith.constant 0 : index
    %6 = vector.load %arg1[%c3, %c0_6, %c0_7] : memref<4x24x128xf32, #tpu.memory_space<vmem>>, vector<1x24x128xf32>
    %7 = vector.shape_cast %6 : vector<1x24x128xf32> to vector<24x128xf32>
    %c0_8 = arith.constant 0 : index
    %8 = memref.load %arg3[%c0_8] : memref<2xf32, #tpu.memory_space<smem>>
    %c1_9 = arith.constant 1 : index
    %9 = memref.load %arg3[%c1_9] : memref<2xf32, #tpu.memory_space<smem>>
    %cst = arith.constant 0.000000e+00 : f32
    %10 = vector.broadcast %cst : f32 to vector<24x128xf32>
    %11 = arith.cmpf oge, %1, %10 : vector<24x128xf32>
    %cst_10 = arith.constant 0.000000e+00 : f32
    %12 = vector.broadcast %cst_10 : f32 to vector<24x128xf32>
    %13 = arith.cmpf oge, %3, %12 : vector<24x128xf32>
    %14 = arith.andi %11, %13 : vector<24x128xi1>
    %15 = vector.broadcast %8 : f32 to vector<24x128xf32>
    %16 = arith.cmpf olt, %5, %15 : vector<24x128xf32>
    %17 = arith.andi %14, %16 : vector<24x128xi1>
    %18 = vector.broadcast %9 : f32 to vector<24x128xf32>
    %19 = arith.cmpf olt, %7, %18 : vector<24x128xf32>
    %20 = arith.andi %17, %19 : vector<24x128xi1>
    %21 = arith.subf %5, %1 : vector<24x128xf32>
    %cst_11 = arith.constant 1.000000e+00 : f32
    %22 = vector.broadcast %cst_11 : f32 to vector<24x128xf32>
    %23 = arith.addf %21, %22 : vector<24x128xf32>
    %24 = arith.subf %7, %3 : vector<24x128xf32>
    %cst_12 = arith.constant 1.000000e+00 : f32
    %25 = vector.broadcast %cst_12 : f32 to vector<24x128xf32>
    %26 = arith.addf %24, %25 : vector<24x128xf32>
    %27 = arith.mulf %23, %26 : vector<24x128xf32>
    %cst_13 = arith.constant 0xFF800000 : f32
    %28 = vector.broadcast %cst_13 : f32 to vector<24x128xf32>
    %c0_i32 = arith.constant 0 : i32
    %29 = vector.broadcast %c0_i32 : i32 to vector<24x128xi32>
    %false = arith.constant false
    %30 = vector.broadcast %false : i1 to vector<24x128xi1>
    %c0_14 = arith.constant 0 : index
    %31 = memref.load %arg2[%c0_14] : memref<16xf32, #tpu.memory_space<smem>>
    %c1_15 = arith.constant 1 : index
    %32 = memref.load %arg2[%c1_15] : memref<16xf32, #tpu.memory_space<smem>>
    %c2_16 = arith.constant 2 : index
    %33 = memref.load %arg2[%c2_16] : memref<16xf32, #tpu.memory_space<smem>>
    %c3_17 = arith.constant 3 : index
    %34 = memref.load %arg2[%c3_17] : memref<16xf32, #tpu.memory_space<smem>>
    %35 = arith.subf %33, %31 : f32
    %cst_18 = arith.constant 1.000000e+00 : f32
    %36 = arith.addf %35, %cst_18 : f32
    %37 = arith.subf %34, %32 : f32
    %cst_19 = arith.constant 1.000000e+00 : f32
    %38 = arith.addf %37, %cst_19 : f32
    %cst_20 = arith.constant 0.000000e+00 : f32
    %39 = arith.cmpf ogt, %36, %cst_20 : f32
    %cst_21 = arith.constant 0.000000e+00 : f32
    %40 = arith.cmpf ogt, %38, %cst_21 : f32
    %41 = arith.andi %39, %40 : i1
    %42 = arith.mulf %36, %38 : f32
    %cst_22 = arith.constant 0.000000e+00 : f32
    %43 = arith.select %41, %42, %cst_22 : f32
    %44 = vector.broadcast %33 : f32 to vector<24x128xf32>
    %45 = arith.minimumf %5, %44 : vector<24x128xf32>
    %46 = vector.broadcast %31 : f32 to vector<24x128xf32>
    %47 = arith.maximumf %1, %46 : vector<24x128xf32>
    %48 = arith.subf %45, %47 : vector<24x128xf32>
    %cst_23 = arith.constant 1.000000e+00 : f32
    %49 = vector.broadcast %cst_23 : f32 to vector<24x128xf32>
    %50 = arith.addf %48, %49 : vector<24x128xf32>
    %51 = vector.broadcast %34 : f32 to vector<24x128xf32>
    %52 = arith.minimumf %7, %51 : vector<24x128xf32>
    %53 = vector.broadcast %32 : f32 to vector<24x128xf32>
    %54 = arith.maximumf %3, %53 : vector<24x128xf32>
    %55 = arith.subf %52, %54 : vector<24x128xf32>
    %cst_24 = arith.constant 1.000000e+00 : f32
    %56 = vector.broadcast %cst_24 : f32 to vector<24x128xf32>
    %57 = arith.addf %55, %56 : vector<24x128xf32>
    %cst_25 = arith.constant 0.000000e+00 : f32
    %58 = vector.broadcast %cst_25 : f32 to vector<24x128xf32>
    %59 = arith.maximumf %50, %58 : vector<24x128xf32>
    %cst_26 = arith.constant 0.000000e+00 : f32
    %60 = vector.broadcast %cst_26 : f32 to vector<24x128xf32>
    %61 = arith.maximumf %57, %60 : vector<24x128xf32>
    %62 = arith.mulf %59, %61 : vector<24x128xf32>
    %63 = vector.broadcast %43 : f32 to vector<24x128xf32>
    %64 = arith.addf %27, %63 : vector<24x128xf32>
    %65 = arith.subf %64, %62 : vector<24x128xf32>
    %66 = tpu.reciprocal %65 {approx = true} : vector<24x128xf32> -> vector<24x128xf32>
    %67 = arith.mulf %62, %66 : vector<24x128xf32>
    %68 = arith.cmpf ogt, %67, %28 : vector<24x128xf32>
    %69 = arith.select %68, %67, %28 : vector<24x128xi1>, vector<24x128xf32>
    %c0_i32_27 = arith.constant 0 : i32
    %70 = vector.broadcast %c0_i32_27 : i32 to vector<24x128xi32>
    %71 = arith.select %68, %70, %29 : vector<24x128xi1>, vector<24x128xi32>
    %cst_28 = arith.constant -1.000000e+00 : f32
    %72 = vector.broadcast %cst_28 : f32 to vector<24x128xf32>
    %73 = arith.select %20, %67, %72 : vector<24x128xi1>, vector<24x128xf32>
    %c0_29 = arith.constant 0 : index
    %74 = memref.load %arg4[%c0_29] : memref<128xf32, #tpu.memory_space<smem>>
    %75 = vector.broadcast %74 : f32 to vector<24x128xf32>
    %76 = arith.cmpf oeq, %73, %75 : vector<24x128xf32>
    %77 = arith.ori %30, %76 : vector<24x128xi1>
    %c4 = arith.constant 4 : index
    %78 = memref.load %arg2[%c4] : memref<16xf32, #tpu.memory_space<smem>>
    %c5 = arith.constant 5 : index
    %79 = memref.load %arg2[%c5] : memref<16xf32, #tpu.memory_space<smem>>
    %c6 = arith.constant 6 : index
    %80 = memref.load %arg2[%c6] : memref<16xf32, #tpu.memory_space<smem>>
    %c7 = arith.constant 7 : index
    %81 = memref.load %arg2[%c7] : memref<16xf32, #tpu.memory_space<smem>>
    %82 = arith.subf %80, %78 : f32
    %cst_30 = arith.constant 1.000000e+00 : f32
    %83 = arith.addf %82, %cst_30 : f32
    %84 = arith.subf %81, %79 : f32
    %cst_31 = arith.constant 1.000000e+00 : f32
    %85 = arith.addf %84, %cst_31 : f32
    %cst_32 = arith.constant 0.000000e+00 : f32
    %86 = arith.cmpf ogt, %83, %cst_32 : f32
    %cst_33 = arith.constant 0.000000e+00 : f32
    %87 = arith.cmpf ogt, %85, %cst_33 : f32
    %88 = arith.andi %86, %87 : i1
    %89 = arith.mulf %83, %85 : f32
    %cst_34 = arith.constant 0.000000e+00 : f32
    %90 = arith.select %88, %89, %cst_34 : f32
    %91 = vector.broadcast %80 : f32 to vector<24x128xf32>
    %92 = arith.minimumf %5, %91 : vector<24x128xf32>
    %93 = vector.broadcast %78 : f32 to vector<24x128xf32>
    %94 = arith.maximumf %1, %93 : vector<24x128xf32>
    %95 = arith.subf %92, %94 : vector<24x128xf32>
    %cst_35 = arith.constant 1.000000e+00 : f32
    %96 = vector.broadcast %cst_35 : f32 to vector<24x128xf32>
    %97 = arith.addf %95, %96 : vector<24x128xf32>
    %98 = vector.broadcast %81 : f32 to vector<24x128xf32>
    %99 = arith.minimumf %7, %98 : vector<24x128xf32>
    %100 = vector.broadcast %79 : f32 to vector<24x128xf32>
    %101 = arith.maximumf %3, %100 : vector<24x128xf32>
    %102 = arith.subf %99, %101 : vector<24x128xf32>
    %cst_36 = arith.constant 1.000000e+00 : f32
    %103 = vector.broadcast %cst_36 : f32 to vector<24x128xf32>
    %104 = arith.addf %102, %103 : vector<24x128xf32>
    %cst_37 = arith.constant 0.000000e+00 : f32
    %105 = vector.broadcast %cst_37 : f32 to vector<24x128xf32>
    %106 = arith.maximumf %97, %105 : vector<24x128xf32>
    %cst_38 = arith.constant 0.000000e+00 : f32
    %107 = vector.broadcast %cst_38 : f32 to vector<24x128xf32>
    %108 = arith.maximumf %104, %107 : vector<24x128xf32>
    %109 = arith.mulf %106, %108 : vector<24x128xf32>
    %110 = vector.broadcast %90 : f32 to vector<24x128xf32>
    %111 = arith.addf %27, %110 : vector<24x128xf32>
    %112 = arith.subf %111, %109 : vector<24x128xf32>
    %113 = tpu.reciprocal %112 {approx = true} : vector<24x128xf32> -> vector<24x128xf32>
    %114 = arith.mulf %109, %113 : vector<24x128xf32>
    %115 = arith.cmpf ogt, %114, %69 : vector<24x128xf32>
    %116 = arith.select %115, %114, %69 : vector<24x128xi1>, vector<24x128xf32>
    %c1_i32 = arith.constant 1 : i32
    %117 = vector.broadcast %c1_i32 : i32 to vector<24x128xi32>
    %118 = arith.select %115, %117, %71 : vector<24x128xi1>, vector<24x128xi32>
    %cst_39 = arith.constant -1.000000e+00 : f32
    %119 = vector.broadcast %cst_39 : f32 to vector<24x128xf32>
    %120 = arith.select %20, %114, %119 : vector<24x128xi1>, vector<24x128xf32>
    %c1_40 = arith.constant 1 : index
    %121 = memref.load %arg4[%c1_40] : memref<128xf32, #tpu.memory_space<smem>>
    %122 = vector.broadcast %121 : f32 to vector<24x128xf32>
    %123 = arith.cmpf oeq, %120, %122 : vector<24x128xf32>
    %124 = arith.ori %77, %123 : vector<24x128xi1>
    %c8 = arith.constant 8 : index
    %125 = memref.load %arg2[%c8] : memref<16xf32, #tpu.memory_space<smem>>
    %c9 = arith.constant 9 : index
    %126 = memref.load %arg2[%c9] : memref<16xf32, #tpu.memory_space<smem>>
    %c10 = arith.constant 10 : index
    %127 = memref.load %arg2[%c10] : memref<16xf32, #tpu.memory_space<smem>>
    %c11 = arith.constant 11 : index
    %128 = memref.load %arg2[%c11] : memref<16xf32, #tpu.memory_space<smem>>
    %129 = arith.subf %127, %125 : f32
    %cst_41 = arith.constant 1.000000e+00 : f32
    %130 = arith.addf %129, %cst_41 : f32
    %131 = arith.subf %128, %126 : f32
    %cst_42 = arith.constant 1.000000e+00 : f32
    %132 = arith.addf %131, %cst_42 : f32
    %cst_43 = arith.constant 0.000000e+00 : f32
    %133 = arith.cmpf ogt, %130, %cst_43 : f32
    %cst_44 = arith.constant 0.000000e+00 : f32
    %134 = arith.cmpf ogt, %132, %cst_44 : f32
    %135 = arith.andi %133, %134 : i1
    %136 = arith.mulf %130, %132 : f32
    %cst_45 = arith.constant 0.000000e+00 : f32
    %137 = arith.select %135, %136, %cst_45 : f32
    %138 = vector.broadcast %127 : f32 to vector<24x128xf32>
    %139 = arith.minimumf %5, %138 : vector<24x128xf32>
    %140 = vector.broadcast %125 : f32 to vector<24x128xf32>
    %141 = arith.maximumf %1, %140 : vector<24x128xf32>
    %142 = arith.subf %139, %141 : vector<24x128xf32>
    %cst_46 = arith.constant 1.000000e+00 : f32
    %143 = vector.broadcast %cst_46 : f32 to vector<24x128xf32>
    %144 = arith.addf %142, %143 : vector<24x128xf32>
    %145 = vector.broadcast %128 : f32 to vector<24x128xf32>
    %146 = arith.minimumf %7, %145 : vector<24x128xf32>
    %147 = vector.broadcast %126 : f32 to vector<24x128xf32>
    %148 = arith.maximumf %3, %147 : vector<24x128xf32>
    %149 = arith.subf %146, %148 : vector<24x128xf32>
    %cst_47 = arith.constant 1.000000e+00 : f32
    %150 = vector.broadcast %cst_47 : f32 to vector<24x128xf32>
    %151 = arith.addf %149, %150 : vector<24x128xf32>
    %cst_48 = arith.constant 0.000000e+00 : f32
    %152 = vector.broadcast %cst_48 : f32 to vector<24x128xf32>
    %153 = arith.maximumf %144, %152 : vector<24x128xf32>
    %cst_49 = arith.constant 0.000000e+00 : f32
    %154 = vector.broadcast %cst_49 : f32 to vector<24x128xf32>
    %155 = arith.maximumf %151, %154 : vector<24x128xf32>
    %156 = arith.mulf %153, %155 : vector<24x128xf32>
    %157 = vector.broadcast %137 : f32 to vector<24x128xf32>
    %158 = arith.addf %27, %157 : vector<24x128xf32>
    %159 = arith.subf %158, %156 : vector<24x128xf32>
    %160 = tpu.reciprocal %159 {approx = true} : vector<24x128xf32> -> vector<24x128xf32>
    %161 = arith.mulf %156, %160 : vector<24x128xf32>
    %162 = arith.cmpf ogt, %161, %116 : vector<24x128xf32>
    %163 = arith.select %162, %161, %116 : vector<24x128xi1>, vector<24x128xf32>
    %c2_i32 = arith.constant 2 : i32
    %164 = vector.broadcast %c2_i32 : i32 to vector<24x128xi32>
    %165 = arith.select %162, %164, %118 : vector<24x128xi1>, vector<24x128xi32>
    %cst_50 = arith.constant -1.000000e+00 : f32
    %166 = vector.broadcast %cst_50 : f32 to vector<24x128xf32>
    %167 = arith.select %20, %161, %166 : vector<24x128xi1>, vector<24x128xf32>
    %c2_51 = arith.constant 2 : index
    %168 = memref.load %arg4[%c2_51] : memref<128xf32, #tpu.memory_space<smem>>
    %169 = vector.broadcast %168 : f32 to vector<24x128xf32>
    %170 = arith.cmpf oeq, %167, %169 : vector<24x128xf32>
    %171 = arith.ori %124, %170 : vector<24x128xi1>
    %c12 = arith.constant 12 : index
    %172 = memref.load %arg2[%c12] : memref<16xf32, #tpu.memory_space<smem>>
    %c13 = arith.constant 13 : index
    %173 = memref.load %arg2[%c13] : memref<16xf32, #tpu.memory_space<smem>>
    %c14 = arith.constant 14 : index
    %174 = memref.load %arg2[%c14] : memref<16xf32, #tpu.memory_space<smem>>
    %c15 = arith.constant 15 : index
    %175 = memref.load %arg2[%c15] : memref<16xf32, #tpu.memory_space<smem>>
    %176 = arith.subf %174, %172 : f32
    %cst_52 = arith.constant 1.000000e+00 : f32
    %177 = arith.addf %176, %cst_52 : f32
    %178 = arith.subf %175, %173 : f32
    %cst_53 = arith.constant 1.000000e+00 : f32
    %179 = arith.addf %178, %cst_53 : f32
    %cst_54 = arith.constant 0.000000e+00 : f32
    %180 = arith.cmpf ogt, %177, %cst_54 : f32
    %cst_55 = arith.constant 0.000000e+00 : f32
    %181 = arith.cmpf ogt, %179, %cst_55 : f32
    %182 = arith.andi %180, %181 : i1
    %183 = arith.mulf %177, %179 : f32
    %cst_56 = arith.constant 0.000000e+00 : f32
    %184 = arith.select %182, %183, %cst_56 : f32
    %185 = vector.broadcast %174 : f32 to vector<24x128xf32>
    %186 = arith.minimumf %5, %185 : vector<24x128xf32>
    %187 = vector.broadcast %172 : f32 to vector<24x128xf32>
    %188 = arith.maximumf %1, %187 : vector<24x128xf32>
    %189 = arith.subf %186, %188 : vector<24x128xf32>
    %cst_57 = arith.constant 1.000000e+00 : f32
    %190 = vector.broadcast %cst_57 : f32 to vector<24x128xf32>
    %191 = arith.addf %189, %190 : vector<24x128xf32>
    %192 = vector.broadcast %175 : f32 to vector<24x128xf32>
    %193 = arith.minimumf %7, %192 : vector<24x128xf32>
    %194 = vector.broadcast %173 : f32 to vector<24x128xf32>
    %195 = arith.maximumf %3, %194 : vector<24x128xf32>
    %196 = arith.subf %193, %195 : vector<24x128xf32>
    %cst_58 = arith.constant 1.000000e+00 : f32
    %197 = vector.broadcast %cst_58 : f32 to vector<24x128xf32>
    %198 = arith.addf %196, %197 : vector<24x128xf32>
    %cst_59 = arith.constant 0.000000e+00 : f32
    %199 = vector.broadcast %cst_59 : f32 to vector<24x128xf32>
    %200 = arith.maximumf %191, %199 : vector<24x128xf32>
    %cst_60 = arith.constant 0.000000e+00 : f32
    %201 = vector.broadcast %cst_60 : f32 to vector<24x128xf32>
    %202 = arith.maximumf %198, %201 : vector<24x128xf32>
    %203 = arith.mulf %200, %202 : vector<24x128xf32>
    %204 = vector.broadcast %184 : f32 to vector<24x128xf32>
    %205 = arith.addf %27, %204 : vector<24x128xf32>
    %206 = arith.subf %205, %203 : vector<24x128xf32>
    %207 = tpu.reciprocal %206 {approx = true} : vector<24x128xf32> -> vector<24x128xf32>
    %208 = arith.mulf %203, %207 : vector<24x128xf32>
    %209 = arith.cmpf ogt, %208, %163 : vector<24x128xf32>
    %210 = arith.select %209, %208, %163 : vector<24x128xi1>, vector<24x128xf32>
    %c3_i32 = arith.constant 3 : i32
    %211 = vector.broadcast %c3_i32 : i32 to vector<24x128xi32>
    %212 = arith.select %209, %211, %165 : vector<24x128xi1>, vector<24x128xi32>
    %cst_61 = arith.constant -1.000000e+00 : f32
    %213 = vector.broadcast %cst_61 : f32 to vector<24x128xf32>
    %214 = arith.select %20, %208, %213 : vector<24x128xi1>, vector<24x128xf32>
    %c3_62 = arith.constant 3 : index
    %215 = memref.load %arg4[%c3_62] : memref<128xf32, #tpu.memory_space<smem>>
    %216 = vector.broadcast %215 : f32 to vector<24x128xf32>
    %217 = arith.cmpf oeq, %214, %216 : vector<24x128xf32>
    %218 = arith.ori %171, %217 : vector<24x128xi1>
    %cst_63 = arith.constant 0.000000e+00 : f32
    %219 = vector.broadcast %cst_63 : f32 to vector<24x128xf32>
    %cst_64 = arith.constant 0.000000e+00 : f32
    %220 = vector.broadcast %cst_64 : f32 to vector<24x128xf32>
    %cst_65 = arith.constant 1.000000e+00 : f32
    %221 = vector.broadcast %cst_65 : f32 to vector<24x128xf32>
    %cst_66 = arith.constant 1.000000e+00 : f32
    %222 = vector.broadcast %cst_66 : f32 to vector<24x128xf32>
    %c0_67 = arith.constant 0 : index
    %223 = memref.load %arg2[%c0_67] : memref<16xf32, #tpu.memory_space<smem>>
    %c1_68 = arith.constant 1 : index
    %224 = memref.load %arg2[%c1_68] : memref<16xf32, #tpu.memory_space<smem>>
    %c2_69 = arith.constant 2 : index
    %225 = memref.load %arg2[%c2_69] : memref<16xf32, #tpu.memory_space<smem>>
    %c3_70 = arith.constant 3 : index
    %226 = memref.load %arg2[%c3_70] : memref<16xf32, #tpu.memory_space<smem>>
    %c0_i32_71 = arith.constant 0 : i32
    %227 = vector.broadcast %c0_i32_71 : i32 to vector<24x128xi32>
    %228 = arith.cmpi eq, %212, %227 : vector<24x128xi32>
    %229 = arith.addf %223, %225 : f32
    %cst_72 = arith.constant 5.000000e-01 : f32
    %230 = arith.mulf %229, %cst_72 : f32
    %231 = vector.broadcast %230 : f32 to vector<24x128xf32>
    %232 = arith.select %228, %231, %219 : vector<24x128xi1>, vector<24x128xf32>
    %233 = arith.addf %224, %226 : f32
    %cst_73 = arith.constant 5.000000e-01 : f32
    %234 = arith.mulf %233, %cst_73 : f32
    %235 = vector.broadcast %234 : f32 to vector<24x128xf32>
    %236 = arith.select %228, %235, %220 : vector<24x128xi1>, vector<24x128xf32>
    %237 = arith.subf %225, %223 : f32
    %cst_74 = arith.constant 1.000000e+00 : f32
    %238 = arith.addf %237, %cst_74 : f32
    %239 = vector.broadcast %238 : f32 to vector<24x128xf32>
    %240 = arith.select %228, %239, %221 : vector<24x128xi1>, vector<24x128xf32>
    %241 = arith.subf %226, %224 : f32
    %cst_75 = arith.constant 1.000000e+00 : f32
    %242 = arith.addf %241, %cst_75 : f32
    %243 = vector.broadcast %242 : f32 to vector<24x128xf32>
    %244 = arith.select %228, %243, %222 : vector<24x128xi1>, vector<24x128xf32>
    %c4_76 = arith.constant 4 : index
    %245 = memref.load %arg2[%c4_76] : memref<16xf32, #tpu.memory_space<smem>>
    %c5_77 = arith.constant 5 : index
    %246 = memref.load %arg2[%c5_77] : memref<16xf32, #tpu.memory_space<smem>>
    %c6_78 = arith.constant 6 : index
    %247 = memref.load %arg2[%c6_78] : memref<16xf32, #tpu.memory_space<smem>>
    %c7_79 = arith.constant 7 : index
    %248 = memref.load %arg2[%c7_79] : memref<16xf32, #tpu.memory_space<smem>>
    %c1_i32_80 = arith.constant 1 : i32
    %249 = vector.broadcast %c1_i32_80 : i32 to vector<24x128xi32>
    %250 = arith.cmpi eq, %212, %249 : vector<24x128xi32>
    %251 = arith.addf %245, %247 : f32
    %cst_81 = arith.constant 5.000000e-01 : f32
    %252 = arith.mulf %251, %cst_81 : f32
    %253 = vector.broadcast %252 : f32 to vector<24x128xf32>
    %254 = arith.select %250, %253, %232 : vector<24x128xi1>, vector<24x128xf32>
    %255 = arith.addf %246, %248 : f32
    %cst_82 = arith.constant 5.000000e-01 : f32
    %256 = arith.mulf %255, %cst_82 : f32
    %257 = vector.broadcast %256 : f32 to vector<24x128xf32>
    %258 = arith.select %250, %257, %236 : vector<24x128xi1>, vector<24x128xf32>
    %259 = arith.subf %247, %245 : f32
    %cst_83 = arith.constant 1.000000e+00 : f32
    %260 = arith.addf %259, %cst_83 : f32
    %261 = vector.broadcast %260 : f32 to vector<24x128xf32>
    %262 = arith.select %250, %261, %240 : vector<24x128xi1>, vector<24x128xf32>
    %263 = arith.subf %248, %246 : f32
    %cst_84 = arith.constant 1.000000e+00 : f32
    %264 = arith.addf %263, %cst_84 : f32
    %265 = vector.broadcast %264 : f32 to vector<24x128xf32>
    %266 = arith.select %250, %265, %244 : vector<24x128xi1>, vector<24x128xf32>
    %c8_85 = arith.constant 8 : index
    %267 = memref.load %arg2[%c8_85] : memref<16xf32, #tpu.memory_space<smem>>
    %c9_86 = arith.constant 9 : index
    %268 = memref.load %arg2[%c9_86] : memref<16xf32, #tpu.memory_space<smem>>
    %c10_87 = arith.constant 10 : index
    %269 = memref.load %arg2[%c10_87] : memref<16xf32, #tpu.memory_space<smem>>
    %c11_88 = arith.constant 11 : index
    %270 = memref.load %arg2[%c11_88] : memref<16xf32, #tpu.memory_space<smem>>
    %c2_i32_89 = arith.constant 2 : i32
    %271 = vector.broadcast %c2_i32_89 : i32 to vector<24x128xi32>
    %272 = arith.cmpi eq, %212, %271 : vector<24x128xi32>
    %273 = arith.addf %267, %269 : f32
    %cst_90 = arith.constant 5.000000e-01 : f32
    %274 = arith.mulf %273, %cst_90 : f32
    %275 = vector.broadcast %274 : f32 to vector<24x128xf32>
    %276 = arith.select %272, %275, %254 : vector<24x128xi1>, vector<24x128xf32>
    %277 = arith.addf %268, %270 : f32
    %cst_91 = arith.constant 5.000000e-01 : f32
    %278 = arith.mulf %277, %cst_91 : f32
    %279 = vector.broadcast %278 : f32 to vector<24x128xf32>
    %280 = arith.select %272, %279, %258 : vector<24x128xi1>, vector<24x128xf32>
    %281 = arith.subf %269, %267 : f32
    %cst_92 = arith.constant 1.000000e+00 : f32
    %282 = arith.addf %281, %cst_92 : f32
    %283 = vector.broadcast %282 : f32 to vector<24x128xf32>
    %284 = arith.select %272, %283, %262 : vector<24x128xi1>, vector<24x128xf32>
    %285 = arith.subf %270, %268 : f32
    %cst_93 = arith.constant 1.000000e+00 : f32
    %286 = arith.addf %285, %cst_93 : f32
    %287 = vector.broadcast %286 : f32 to vector<24x128xf32>
    %288 = arith.select %272, %287, %266 : vector<24x128xi1>, vector<24x128xf32>
    %c12_94 = arith.constant 12 : index
    %289 = memref.load %arg2[%c12_94] : memref<16xf32, #tpu.memory_space<smem>>
    %c13_95 = arith.constant 13 : index
    %290 = memref.load %arg2[%c13_95] : memref<16xf32, #tpu.memory_space<smem>>
    %c14_96 = arith.constant 14 : index
    %291 = memref.load %arg2[%c14_96] : memref<16xf32, #tpu.memory_space<smem>>
    %c15_97 = arith.constant 15 : index
    %292 = memref.load %arg2[%c15_97] : memref<16xf32, #tpu.memory_space<smem>>
    %c3_i32_98 = arith.constant 3 : i32
    %293 = vector.broadcast %c3_i32_98 : i32 to vector<24x128xi32>
    %294 = arith.cmpi eq, %212, %293 : vector<24x128xi32>
    %295 = arith.addf %289, %291 : f32
    %cst_99 = arith.constant 5.000000e-01 : f32
    %296 = arith.mulf %295, %cst_99 : f32
    %297 = vector.broadcast %296 : f32 to vector<24x128xf32>
    %298 = arith.select %294, %297, %276 : vector<24x128xi1>, vector<24x128xf32>
    %299 = arith.addf %290, %292 : f32
    %cst_100 = arith.constant 5.000000e-01 : f32
    %300 = arith.mulf %299, %cst_100 : f32
    %301 = vector.broadcast %300 : f32 to vector<24x128xf32>
    %302 = arith.select %294, %301, %280 : vector<24x128xi1>, vector<24x128xf32>
    %303 = arith.subf %291, %289 : f32
    %cst_101 = arith.constant 1.000000e+00 : f32
    %304 = arith.addf %303, %cst_101 : f32
    %305 = vector.broadcast %304 : f32 to vector<24x128xf32>
    %306 = arith.select %294, %305, %284 : vector<24x128xi1>, vector<24x128xf32>
    %307 = arith.subf %292, %290 : f32
    %cst_102 = arith.constant 1.000000e+00 : f32
    %308 = arith.addf %307, %cst_102 : f32
    %309 = vector.broadcast %308 : f32 to vector<24x128xf32>
    %310 = arith.select %294, %309, %288 : vector<24x128xi1>, vector<24x128xf32>
    %cst_103 = arith.constant 2.000000e+00 : f32
    %311 = vector.broadcast %cst_103 : f32 to vector<24x128xf32>
    %cst_104 = arith.constant 3.000000e-01 : f32
    %312 = vector.broadcast %cst_104 : f32 to vector<24x128xf32>
    %313 = arith.cmpf olt, %210, %312 : vector<24x128xf32>
    %cst_105 = arith.constant 0.000000e+00 : f32
    %314 = vector.broadcast %cst_105 : f32 to vector<24x128xf32>
    %315 = arith.select %313, %314, %311 : vector<24x128xi1>, vector<24x128xf32>
    %cst_106 = arith.constant 1.000000e+00 : f32
    %316 = vector.broadcast %cst_106 : f32 to vector<24x128xf32>
    %317 = arith.select %218, %316, %315 : vector<24x128xi1>, vector<24x128xf32>
    %cst_107 = arith.constant 0.699999988 : f32
    %318 = vector.broadcast %cst_107 : f32 to vector<24x128xf32>
    %319 = arith.cmpf oge, %210, %318 : vector<24x128xf32>
    %cst_108 = arith.constant 1.000000e+00 : f32
    %320 = vector.broadcast %cst_108 : f32 to vector<24x128xf32>
    %321 = arith.select %319, %320, %317 : vector<24x128xi1>, vector<24x128xf32>
    %cst_109 = arith.constant 2.000000e+00 : f32
    %322 = vector.broadcast %cst_109 : f32 to vector<24x128xf32>
    %323 = arith.select %20, %321, %322 : vector<24x128xi1>, vector<24x128xf32>
    %324 = arith.addf %5, %1 : vector<24x128xf32>
    %cst_110 = arith.constant 5.000000e-01 : f32
    %325 = vector.broadcast %cst_110 : f32 to vector<24x128xf32>
    %326 = arith.mulf %324, %325 : vector<24x128xf32>
    %327 = arith.addf %7, %3 : vector<24x128xf32>
    %cst_111 = arith.constant 5.000000e-01 : f32
    %328 = vector.broadcast %cst_111 : f32 to vector<24x128xf32>
    %329 = arith.mulf %327, %328 : vector<24x128xf32>
    %330 = tpu.reciprocal %23 {approx = true} : vector<24x128xf32> -> vector<24x128xf32>
    %331 = tpu.reciprocal %26 {approx = true} : vector<24x128xf32> -> vector<24x128xf32>
    %332 = arith.subf %298, %326 : vector<24x128xf32>
    %333 = arith.mulf %332, %330 : vector<24x128xf32>
    %334 = arith.subf %302, %329 : vector<24x128xf32>
    %335 = arith.mulf %334, %331 : vector<24x128xf32>
    %336 = arith.mulf %306, %330 : vector<24x128xf32>
    %337 = math.log %336 : vector<24x128xf32>
    %338 = arith.mulf %310, %331 : vector<24x128xf32>
    %339 = math.log %338 : vector<24x128xf32>
    %cst_112 = arith.constant 0.000000e+00 : f32
    %340 = vector.broadcast %cst_112 : f32 to vector<24x128xf32>
    %341 = arith.select %20, %333, %340 : vector<24x128xi1>, vector<24x128xf32>
    %c0_113 = arith.constant 0 : index
    %c0_114 = arith.constant 0 : index
    %c0_115 = arith.constant 0 : index
    %342 = vector.load %arg5[%c0_113, %c0_114, %c0_115] : memref<4x24x128xf32, #tpu.memory_space<vmem>>, vector<1x24x128xf32>
    %343 = vector.shape_cast %342 : vector<1x24x128xf32> to vector<24x128xf32>
    %344 = vector.shape_cast %341 : vector<24x128xf32> to vector<1x24x128xf32>
    tpu.vector_store %arg5[%c0_113, %c0_114, %c0_115], %344 {strides = array<i32>} : memref<4x24x128xf32, #tpu.memory_space<vmem>>, vector<1x24x128xf32>,
    %cst_116 = arith.constant 0.000000e+00 : f32
    %345 = vector.broadcast %cst_116 : f32 to vector<24x128xf32>
    %346 = arith.select %20, %335, %345 : vector<24x128xi1>, vector<24x128xf32>
    %c1_117 = arith.constant 1 : index
    %c0_118 = arith.constant 0 : index
    %c0_119 = arith.constant 0 : index
    %347 = vector.load %arg5[%c1_117, %c0_118, %c0_119] : memref<4x24x128xf32, #tpu.memory_space<vmem>>, vector<1x24x128xf32>
    %348 = vector.shape_cast %347 : vector<1x24x128xf32> to vector<24x128xf32>
    %349 = vector.shape_cast %346 : vector<24x128xf32> to vector<1x24x128xf32>
    tpu.vector_store %arg5[%c1_117, %c0_118, %c0_119], %349 {strides = array<i32>} : memref<4x24x128xf32, #tpu.memory_space<vmem>>, vector<1x24x128xf32>,
    %cst_120 = arith.constant 0.000000e+00 : f32
    %350 = vector.broadcast %cst_120 : f32 to vector<24x128xf32>
    %351 = arith.select %20, %337, %350 : vector<24x128xi1>, vector<24x128xf32>
    %c2_121 = arith.constant 2 : index
    %c0_122 = arith.constant 0 : index
    %c0_123 = arith.constant 0 : index
    %352 = vector.load %arg5[%c2_121, %c0_122, %c0_123] : memref<4x24x128xf32, #tpu.memory_space<vmem>>, vector<1x24x128xf32>
    %353 = vector.shape_cast %352 : vector<1x24x128xf32> to vector<24x128xf32>
    %354 = vector.shape_cast %351 : vector<24x128xf32> to vector<1x24x128xf32>
    tpu.vector_store %arg5[%c2_121, %c0_122, %c0_123], %354 {strides = array<i32>} : memref<4x24x128xf32, #tpu.memory_space<vmem>>, vector<1x24x128xf32>,
    %cst_124 = arith.constant 0.000000e+00 : f32
    %355 = vector.broadcast %cst_124 : f32 to vector<24x128xf32>
    %356 = arith.select %20, %339, %355 : vector<24x128xi1>, vector<24x128xf32>
    %c3_125 = arith.constant 3 : index
    %c0_126 = arith.constant 0 : index
    %c0_127 = arith.constant 0 : index
    %357 = vector.load %arg5[%c3_125, %c0_126, %c0_127] : memref<4x24x128xf32, #tpu.memory_space<vmem>>, vector<1x24x128xf32>
    %358 = vector.shape_cast %357 : vector<1x24x128xf32> to vector<24x128xf32>
    %359 = vector.shape_cast %356 : vector<24x128xf32> to vector<1x24x128xf32>
    tpu.vector_store %arg5[%c3_125, %c0_126, %c0_127], %359 {strides = array<i32>} : memref<4x24x128xf32, #tpu.memory_space<vmem>>, vector<1x24x128xf32>,
    %c0_128 = arith.constant 0 : index
    %c0_129 = arith.constant 0 : index
    %360 = vector.load %arg6[%c0_128, %c0_129] : memref<24x128xf32, #tpu.memory_space<vmem>>, vector<24x128xf32>
    tpu.vector_store %arg6[%c0_128, %c0_129], %323 {strides = array<i32>} : memref<24x128xf32, #tpu.memory_space<vmem>>, vector<24x128xf32>,
    return
  }
  func.func @transform_0(%arg0: i32) -> (i32, i32, i32) {
    %c0_i32 = arith.constant 0 : i32
    %c0_i32_0 = arith.constant 0 : i32
    %c0_i32_1 = arith.constant 0 : i32
    return %c0_i32, %arg0, %c0_i32_0 : i32, i32, i32
  }
  func.func @transform_1(%arg0: i32) -> i32 {
    %c0_i32 = arith.constant 0 : i32
    %c0_i32_0 = arith.constant 0 : i32
    return %c0_i32 : i32
  }
  func.func @transform_2(%arg0: i32) -> i32 {
    %c0_i32 = arith.constant 0 : i32
    %c0_i32_0 = arith.constant 0 : i32
    return %c0_i32 : i32
  }
  func.func @transform_3(%arg0: i32) -> i32 {
    %c0_i32 = arith.constant 0 : i32
    %c0_i32_0 = arith.constant 0 : i32
    return %c0_i32 : i32
  }
  func.func @transform_4(%arg0: i32) -> (i32, i32, i32) {
    %c0_i32 = arith.constant 0 : i32
    %c0_i32_0 = arith.constant 0 : i32
    %c0_i32_1 = arith.constant 0 : i32
    return %c0_i32, %arg0, %c0_i32_0 : i32, i32, i32
  }
  func.func @transform_5(%arg0: i32) -> (i32, i32) {
    %c0_i32 = arith.constant 0 : i32
    %c0_i32_0 = arith.constant 0 : i32
    return %arg0, %c0_i32 : i32, i32
  }
}

module attributes {stable_mosaic.version = 11 : i64} {
  func.func @_gt_max_kernel(%arg0: i32, %arg1: memref<4x24x128xf32, #tpu.memory_space<vmem>>, %arg2: memref<16xf32, #tpu.memory_space<smem>>, %arg3: memref<2xf32, #tpu.memory_space<smem>>, %arg4: memref<1xi32, #tpu.memory_space<smem>>, %arg5: memref<1x128xf32, #tpu.memory_space<vmem>>) attributes {dimension_semantics = [#tpu.dimension_semantics<arbitrary>], iteration_bounds = array<i64: 1>, scalar_prefetch = 0 : i64, scratch_operands = 0 : i64, tpu.core_type = #tpu.core_type<tc>, window_params = [{transform_indices = @transform_0, window_bounds = array<i64: 4, 24, 128>}, {transform_indices = @transform_1, window_bounds = array<i64: 16>}, {transform_indices = @transform_2, window_bounds = array<i64: 2>}, {transform_indices = @transform_3, window_bounds = array<i64: 1>}, {pipeline_mode = #tpu.pipeline_mode<synchronous>, transform_indices = @transform_4, window_bounds = array<i64: 1, 128>}]} {
    %c0_i32 = arith.constant 0 : i32
    %0 = arith.cmpi eq, %arg0, %c0_i32 : i32
    %1 = arith.extui %0 : i1 to i32
    %c0_i32_0 = arith.constant 0 : i32
    %2 = arith.cmpi ne, %1, %c0_i32_0 : i32
    scf.if %2 {
      %cst_69 = arith.constant -2.000000e+00 : f32
      %229 = vector.broadcast %cst_69 : f32 to vector<1x128xf32>
      %c0_70 = arith.constant 0 : index
      %c0_71 = arith.constant 0 : index
      %230 = vector.load %arg5[%c0_70, %c0_71] : memref<1x128xf32, #tpu.memory_space<vmem>>, vector<1x128xf32>
      tpu.vector_store %arg5[%c0_70, %c0_71], %229 {strides = array<i32>} : memref<1x128xf32, #tpu.memory_space<vmem>>, vector<1x128xf32>,
    } else {
    }
    %c0 = arith.constant 0 : index
    %c0_1 = arith.constant 0 : index
    %c0_2 = arith.constant 0 : index
    %3 = vector.load %arg1[%c0, %c0_1, %c0_2] : memref<4x24x128xf32, #tpu.memory_space<vmem>>, vector<1x24x128xf32>
    %4 = vector.shape_cast %3 : vector<1x24x128xf32> to vector<24x128xf32>
    %c1 = arith.constant 1 : index
    %c0_3 = arith.constant 0 : index
    %c0_4 = arith.constant 0 : index
    %5 = vector.load %arg1[%c1, %c0_3, %c0_4] : memref<4x24x128xf32, #tpu.memory_space<vmem>>, vector<1x24x128xf32>
    %6 = vector.shape_cast %5 : vector<1x24x128xf32> to vector<24x128xf32>
    %c2 = arith.constant 2 : index
    %c0_5 = arith.constant 0 : index
    %c0_6 = arith.constant 0 : index
    %7 = vector.load %arg1[%c2, %c0_5, %c0_6] : memref<4x24x128xf32, #tpu.memory_space<vmem>>, vector<1x24x128xf32>
    %8 = vector.shape_cast %7 : vector<1x24x128xf32> to vector<24x128xf32>
    %c3 = arith.constant 3 : index
    %c0_7 = arith.constant 0 : index
    %c0_8 = arith.constant 0 : index
    %9 = vector.load %arg1[%c3, %c0_7, %c0_8] : memref<4x24x128xf32, #tpu.memory_space<vmem>>, vector<1x24x128xf32>
    %10 = vector.shape_cast %9 : vector<1x24x128xf32> to vector<24x128xf32>
    %c0_9 = arith.constant 0 : index
    %11 = memref.load %arg3[%c0_9] : memref<2xf32, #tpu.memory_space<smem>>
    %c1_10 = arith.constant 1 : index
    %12 = memref.load %arg3[%c1_10] : memref<2xf32, #tpu.memory_space<smem>>
    %cst = arith.constant 0.000000e+00 : f32
    %13 = vector.broadcast %cst : f32 to vector<24x128xf32>
    %14 = arith.cmpf oge, %4, %13 : vector<24x128xf32>
    %cst_11 = arith.constant 0.000000e+00 : f32
    %15 = vector.broadcast %cst_11 : f32 to vector<24x128xf32>
    %16 = arith.cmpf oge, %6, %15 : vector<24x128xf32>
    %17 = arith.andi %14, %16 : vector<24x128xi1>
    %18 = vector.broadcast %11 : f32 to vector<24x128xf32>
    %19 = arith.cmpf olt, %8, %18 : vector<24x128xf32>
    %20 = arith.andi %17, %19 : vector<24x128xi1>
    %21 = vector.broadcast %12 : f32 to vector<24x128xf32>
    %22 = arith.cmpf olt, %10, %21 : vector<24x128xf32>
    %23 = arith.andi %20, %22 : vector<24x128xi1>
    %24 = arith.subf %8, %4 : vector<24x128xf32>
    %cst_12 = arith.constant 1.000000e+00 : f32
    %25 = vector.broadcast %cst_12 : f32 to vector<24x128xf32>
    %26 = arith.addf %24, %25 : vector<24x128xf32>
    %27 = arith.subf %10, %6 : vector<24x128xf32>
    %cst_13 = arith.constant 1.000000e+00 : f32
    %28 = vector.broadcast %cst_13 : f32 to vector<24x128xf32>
    %29 = arith.addf %27, %28 : vector<24x128xf32>
    %30 = arith.mulf %26, %29 : vector<24x128xf32>
    %31 = tpu.iota {dimensions = array<i32: 1>} : vector<1x128xi32>
    %c0_14 = arith.constant 0 : index
    %c0_15 = arith.constant 0 : index
    %32 = vector.load %arg5[%c0_14, %c0_15] : memref<1x128xf32, #tpu.memory_space<vmem>>, vector<1x128xf32>
    %c0_16 = arith.constant 0 : index
    %33 = memref.load %arg2[%c0_16] : memref<16xf32, #tpu.memory_space<smem>>
    %c1_17 = arith.constant 1 : index
    %34 = memref.load %arg2[%c1_17] : memref<16xf32, #tpu.memory_space<smem>>
    %c2_18 = arith.constant 2 : index
    %35 = memref.load %arg2[%c2_18] : memref<16xf32, #tpu.memory_space<smem>>
    %c3_19 = arith.constant 3 : index
    %36 = memref.load %arg2[%c3_19] : memref<16xf32, #tpu.memory_space<smem>>
    %37 = arith.subf %35, %33 : f32
    %cst_20 = arith.constant 1.000000e+00 : f32
    %38 = arith.addf %37, %cst_20 : f32
    %39 = arith.subf %36, %34 : f32
    %cst_21 = arith.constant 1.000000e+00 : f32
    %40 = arith.addf %39, %cst_21 : f32
    %cst_22 = arith.constant 0.000000e+00 : f32
    %41 = arith.cmpf ogt, %38, %cst_22 : f32
    %cst_23 = arith.constant 0.000000e+00 : f32
    %42 = arith.cmpf ogt, %40, %cst_23 : f32
    %43 = arith.andi %41, %42 : i1
    %44 = arith.mulf %38, %40 : f32
    %cst_24 = arith.constant 0.000000e+00 : f32
    %45 = arith.select %43, %44, %cst_24 : f32
    %46 = vector.broadcast %35 : f32 to vector<24x128xf32>
    %47 = arith.minimumf %8, %46 : vector<24x128xf32>
    %48 = vector.broadcast %33 : f32 to vector<24x128xf32>
    %49 = arith.maximumf %4, %48 : vector<24x128xf32>
    %50 = arith.subf %47, %49 : vector<24x128xf32>
    %cst_25 = arith.constant 1.000000e+00 : f32
    %51 = vector.broadcast %cst_25 : f32 to vector<24x128xf32>
    %52 = arith.addf %50, %51 : vector<24x128xf32>
    %53 = vector.broadcast %36 : f32 to vector<24x128xf32>
    %54 = arith.minimumf %10, %53 : vector<24x128xf32>
    %55 = vector.broadcast %34 : f32 to vector<24x128xf32>
    %56 = arith.maximumf %6, %55 : vector<24x128xf32>
    %57 = arith.subf %54, %56 : vector<24x128xf32>
    %cst_26 = arith.constant 1.000000e+00 : f32
    %58 = vector.broadcast %cst_26 : f32 to vector<24x128xf32>
    %59 = arith.addf %57, %58 : vector<24x128xf32>
    %cst_27 = arith.constant 0.000000e+00 : f32
    %60 = vector.broadcast %cst_27 : f32 to vector<24x128xf32>
    %61 = arith.maximumf %52, %60 : vector<24x128xf32>
    %cst_28 = arith.constant 0.000000e+00 : f32
    %62 = vector.broadcast %cst_28 : f32 to vector<24x128xf32>
    %63 = arith.maximumf %59, %62 : vector<24x128xf32>
    %64 = arith.mulf %61, %63 : vector<24x128xf32>
    %65 = vector.broadcast %45 : f32 to vector<24x128xf32>
    %66 = arith.addf %30, %65 : vector<24x128xf32>
    %67 = arith.subf %66, %64 : vector<24x128xf32>
    %68 = tpu.reciprocal %67 {approx = true} : vector<24x128xf32> -> vector<24x128xf32>
    %69 = arith.mulf %64, %68 : vector<24x128xf32>
    %cst_29 = arith.constant -1.000000e+00 : f32
    %70 = vector.broadcast %cst_29 : f32 to vector<24x128xf32>
    %71 = arith.select %23, %69, %70 : vector<24x128xi1>, vector<24x128xf32>
    %72 = vector.shape_cast %71 : vector<24x128xf32> to vector<1x24x128xf32>
    %cst_30 = arith.constant dense<0xFF800000> : vector<1xf32>
    %73 = vector.multi_reduction <maximumf>, %72, %cst_30 [1, 2] : vector<1x24x128xf32> to vector<1xf32>
    %74 = vector.shape_cast %73 : vector<1xf32> to vector<1x1x1xf32>
    %75 = vector.extract %74[0, 0, 0] : f32 from vector<1x1x1xf32>
    %c0_i32_31 = arith.constant 0 : i32
    %76 = vector.broadcast %c0_i32_31 : i32 to vector<1x128xi32>
    %77 = arith.cmpi eq, %31, %76 : vector<1x128xi32>
    %78 = vector.broadcast %75 : f32 to vector<1x128xf32>
    %79 = arith.maximumf %32, %78 : vector<1x128xf32>
    %80 = arith.select %77, %79, %32 : vector<1x128xi1>, vector<1x128xf32>
    %c4 = arith.constant 4 : index
    %81 = memref.load %arg2[%c4] : memref<16xf32, #tpu.memory_space<smem>>
    %c5 = arith.constant 5 : index
    %82 = memref.load %arg2[%c5] : memref<16xf32, #tpu.memory_space<smem>>
    %c6 = arith.constant 6 : index
    %83 = memref.load %arg2[%c6] : memref<16xf32, #tpu.memory_space<smem>>
    %c7 = arith.constant 7 : index
    %84 = memref.load %arg2[%c7] : memref<16xf32, #tpu.memory_space<smem>>
    %85 = arith.subf %83, %81 : f32
    %cst_32 = arith.constant 1.000000e+00 : f32
    %86 = arith.addf %85, %cst_32 : f32
    %87 = arith.subf %84, %82 : f32
    %cst_33 = arith.constant 1.000000e+00 : f32
    %88 = arith.addf %87, %cst_33 : f32
    %cst_34 = arith.constant 0.000000e+00 : f32
    %89 = arith.cmpf ogt, %86, %cst_34 : f32
    %cst_35 = arith.constant 0.000000e+00 : f32
    %90 = arith.cmpf ogt, %88, %cst_35 : f32
    %91 = arith.andi %89, %90 : i1
    %92 = arith.mulf %86, %88 : f32
    %cst_36 = arith.constant 0.000000e+00 : f32
    %93 = arith.select %91, %92, %cst_36 : f32
    %94 = vector.broadcast %83 : f32 to vector<24x128xf32>
    %95 = arith.minimumf %8, %94 : vector<24x128xf32>
    %96 = vector.broadcast %81 : f32 to vector<24x128xf32>
    %97 = arith.maximumf %4, %96 : vector<24x128xf32>
    %98 = arith.subf %95, %97 : vector<24x128xf32>
    %cst_37 = arith.constant 1.000000e+00 : f32
    %99 = vector.broadcast %cst_37 : f32 to vector<24x128xf32>
    %100 = arith.addf %98, %99 : vector<24x128xf32>
    %101 = vector.broadcast %84 : f32 to vector<24x128xf32>
    %102 = arith.minimumf %10, %101 : vector<24x128xf32>
    %103 = vector.broadcast %82 : f32 to vector<24x128xf32>
    %104 = arith.maximumf %6, %103 : vector<24x128xf32>
    %105 = arith.subf %102, %104 : vector<24x128xf32>
    %cst_38 = arith.constant 1.000000e+00 : f32
    %106 = vector.broadcast %cst_38 : f32 to vector<24x128xf32>
    %107 = arith.addf %105, %106 : vector<24x128xf32>
    %cst_39 = arith.constant 0.000000e+00 : f32
    %108 = vector.broadcast %cst_39 : f32 to vector<24x128xf32>
    %109 = arith.maximumf %100, %108 : vector<24x128xf32>
    %cst_40 = arith.constant 0.000000e+00 : f32
    %110 = vector.broadcast %cst_40 : f32 to vector<24x128xf32>
    %111 = arith.maximumf %107, %110 : vector<24x128xf32>
    %112 = arith.mulf %109, %111 : vector<24x128xf32>
    %113 = vector.broadcast %93 : f32 to vector<24x128xf32>
    %114 = arith.addf %30, %113 : vector<24x128xf32>
    %115 = arith.subf %114, %112 : vector<24x128xf32>
    %116 = tpu.reciprocal %115 {approx = true} : vector<24x128xf32> -> vector<24x128xf32>
    %117 = arith.mulf %112, %116 : vector<24x128xf32>
    %cst_41 = arith.constant -1.000000e+00 : f32
    %118 = vector.broadcast %cst_41 : f32 to vector<24x128xf32>
    %119 = arith.select %23, %117, %118 : vector<24x128xi1>, vector<24x128xf32>
    %120 = vector.shape_cast %119 : vector<24x128xf32> to vector<1x24x128xf32>
    %cst_42 = arith.constant dense<0xFF800000> : vector<1xf32>
    %121 = vector.multi_reduction <maximumf>, %120, %cst_42 [1, 2] : vector<1x24x128xf32> to vector<1xf32>
    %122 = vector.shape_cast %121 : vector<1xf32> to vector<1x1x1xf32>
    %123 = vector.extract %122[0, 0, 0] : f32 from vector<1x1x1xf32>
    %c1_i32 = arith.constant 1 : i32
    %124 = vector.broadcast %c1_i32 : i32 to vector<1x128xi32>
    %125 = arith.cmpi eq, %31, %124 : vector<1x128xi32>
    %126 = vector.broadcast %123 : f32 to vector<1x128xf32>
    %127 = arith.maximumf %80, %126 : vector<1x128xf32>
    %128 = arith.select %125, %127, %80 : vector<1x128xi1>, vector<1x128xf32>
    %c8 = arith.constant 8 : index
    %129 = memref.load %arg2[%c8] : memref<16xf32, #tpu.memory_space<smem>>
    %c9 = arith.constant 9 : index
    %130 = memref.load %arg2[%c9] : memref<16xf32, #tpu.memory_space<smem>>
    %c10 = arith.constant 10 : index
    %131 = memref.load %arg2[%c10] : memref<16xf32, #tpu.memory_space<smem>>
    %c11 = arith.constant 11 : index
    %132 = memref.load %arg2[%c11] : memref<16xf32, #tpu.memory_space<smem>>
    %133 = arith.subf %131, %129 : f32
    %cst_43 = arith.constant 1.000000e+00 : f32
    %134 = arith.addf %133, %cst_43 : f32
    %135 = arith.subf %132, %130 : f32
    %cst_44 = arith.constant 1.000000e+00 : f32
    %136 = arith.addf %135, %cst_44 : f32
    %cst_45 = arith.constant 0.000000e+00 : f32
    %137 = arith.cmpf ogt, %134, %cst_45 : f32
    %cst_46 = arith.constant 0.000000e+00 : f32
    %138 = arith.cmpf ogt, %136, %cst_46 : f32
    %139 = arith.andi %137, %138 : i1
    %140 = arith.mulf %134, %136 : f32
    %cst_47 = arith.constant 0.000000e+00 : f32
    %141 = arith.select %139, %140, %cst_47 : f32
    %142 = vector.broadcast %131 : f32 to vector<24x128xf32>
    %143 = arith.minimumf %8, %142 : vector<24x128xf32>
    %144 = vector.broadcast %129 : f32 to vector<24x128xf32>
    %145 = arith.maximumf %4, %144 : vector<24x128xf32>
    %146 = arith.subf %143, %145 : vector<24x128xf32>
    %cst_48 = arith.constant 1.000000e+00 : f32
    %147 = vector.broadcast %cst_48 : f32 to vector<24x128xf32>
    %148 = arith.addf %146, %147 : vector<24x128xf32>
    %149 = vector.broadcast %132 : f32 to vector<24x128xf32>
    %150 = arith.minimumf %10, %149 : vector<24x128xf32>
    %151 = vector.broadcast %130 : f32 to vector<24x128xf32>
    %152 = arith.maximumf %6, %151 : vector<24x128xf32>
    %153 = arith.subf %150, %152 : vector<24x128xf32>
    %cst_49 = arith.constant 1.000000e+00 : f32
    %154 = vector.broadcast %cst_49 : f32 to vector<24x128xf32>
    %155 = arith.addf %153, %154 : vector<24x128xf32>
    %cst_50 = arith.constant 0.000000e+00 : f32
    %156 = vector.broadcast %cst_50 : f32 to vector<24x128xf32>
    %157 = arith.maximumf %148, %156 : vector<24x128xf32>
    %cst_51 = arith.constant 0.000000e+00 : f32
    %158 = vector.broadcast %cst_51 : f32 to vector<24x128xf32>
    %159 = arith.maximumf %155, %158 : vector<24x128xf32>
    %160 = arith.mulf %157, %159 : vector<24x128xf32>
    %161 = vector.broadcast %141 : f32 to vector<24x128xf32>
    %162 = arith.addf %30, %161 : vector<24x128xf32>
    %163 = arith.subf %162, %160 : vector<24x128xf32>
    %164 = tpu.reciprocal %163 {approx = true} : vector<24x128xf32> -> vector<24x128xf32>
    %165 = arith.mulf %160, %164 : vector<24x128xf32>
    %cst_52 = arith.constant -1.000000e+00 : f32
    %166 = vector.broadcast %cst_52 : f32 to vector<24x128xf32>
    %167 = arith.select %23, %165, %166 : vector<24x128xi1>, vector<24x128xf32>
    %168 = vector.shape_cast %167 : vector<24x128xf32> to vector<1x24x128xf32>
    %cst_53 = arith.constant dense<0xFF800000> : vector<1xf32>
    %169 = vector.multi_reduction <maximumf>, %168, %cst_53 [1, 2] : vector<1x24x128xf32> to vector<1xf32>
    %170 = vector.shape_cast %169 : vector<1xf32> to vector<1x1x1xf32>
    %171 = vector.extract %170[0, 0, 0] : f32 from vector<1x1x1xf32>
    %c2_i32 = arith.constant 2 : i32
    %172 = vector.broadcast %c2_i32 : i32 to vector<1x128xi32>
    %173 = arith.cmpi eq, %31, %172 : vector<1x128xi32>
    %174 = vector.broadcast %171 : f32 to vector<1x128xf32>
    %175 = arith.maximumf %128, %174 : vector<1x128xf32>
    %176 = arith.select %173, %175, %128 : vector<1x128xi1>, vector<1x128xf32>
    %c12 = arith.constant 12 : index
    %177 = memref.load %arg2[%c12] : memref<16xf32, #tpu.memory_space<smem>>
    %c13 = arith.constant 13 : index
    %178 = memref.load %arg2[%c13] : memref<16xf32, #tpu.memory_space<smem>>
    %c14 = arith.constant 14 : index
    %179 = memref.load %arg2[%c14] : memref<16xf32, #tpu.memory_space<smem>>
    %c15 = arith.constant 15 : index
    %180 = memref.load %arg2[%c15] : memref<16xf32, #tpu.memory_space<smem>>
    %181 = arith.subf %179, %177 : f32
    %cst_54 = arith.constant 1.000000e+00 : f32
    %182 = arith.addf %181, %cst_54 : f32
    %183 = arith.subf %180, %178 : f32
    %cst_55 = arith.constant 1.000000e+00 : f32
    %184 = arith.addf %183, %cst_55 : f32
    %cst_56 = arith.constant 0.000000e+00 : f32
    %185 = arith.cmpf ogt, %182, %cst_56 : f32
    %cst_57 = arith.constant 0.000000e+00 : f32
    %186 = arith.cmpf ogt, %184, %cst_57 : f32
    %187 = arith.andi %185, %186 : i1
    %188 = arith.mulf %182, %184 : f32
    %cst_58 = arith.constant 0.000000e+00 : f32
    %189 = arith.select %187, %188, %cst_58 : f32
    %190 = vector.broadcast %179 : f32 to vector<24x128xf32>
    %191 = arith.minimumf %8, %190 : vector<24x128xf32>
    %192 = vector.broadcast %177 : f32 to vector<24x128xf32>
    %193 = arith.maximumf %4, %192 : vector<24x128xf32>
    %194 = arith.subf %191, %193 : vector<24x128xf32>
    %cst_59 = arith.constant 1.000000e+00 : f32
    %195 = vector.broadcast %cst_59 : f32 to vector<24x128xf32>
    %196 = arith.addf %194, %195 : vector<24x128xf32>
    %197 = vector.broadcast %180 : f32 to vector<24x128xf32>
    %198 = arith.minimumf %10, %197 : vector<24x128xf32>
    %199 = vector.broadcast %178 : f32 to vector<24x128xf32>
    %200 = arith.maximumf %6, %199 : vector<24x128xf32>
    %201 = arith.subf %198, %200 : vector<24x128xf32>
    %cst_60 = arith.constant 1.000000e+00 : f32
    %202 = vector.broadcast %cst_60 : f32 to vector<24x128xf32>
    %203 = arith.addf %201, %202 : vector<24x128xf32>
    %cst_61 = arith.constant 0.000000e+00 : f32
    %204 = vector.broadcast %cst_61 : f32 to vector<24x128xf32>
    %205 = arith.maximumf %196, %204 : vector<24x128xf32>
    %cst_62 = arith.constant 0.000000e+00 : f32
    %206 = vector.broadcast %cst_62 : f32 to vector<24x128xf32>
    %207 = arith.maximumf %203, %206 : vector<24x128xf32>
    %208 = arith.mulf %205, %207 : vector<24x128xf32>
    %209 = vector.broadcast %189 : f32 to vector<24x128xf32>
    %210 = arith.addf %30, %209 : vector<24x128xf32>
    %211 = arith.subf %210, %208 : vector<24x128xf32>
    %212 = tpu.reciprocal %211 {approx = true} : vector<24x128xf32> -> vector<24x128xf32>
    %213 = arith.mulf %208, %212 : vector<24x128xf32>
    %cst_63 = arith.constant -1.000000e+00 : f32
    %214 = vector.broadcast %cst_63 : f32 to vector<24x128xf32>
    %215 = arith.select %23, %213, %214 : vector<24x128xi1>, vector<24x128xf32>
    %216 = vector.shape_cast %215 : vector<24x128xf32> to vector<1x24x128xf32>
    %cst_64 = arith.constant dense<0xFF800000> : vector<1xf32>
    %217 = vector.multi_reduction <maximumf>, %216, %cst_64 [1, 2] : vector<1x24x128xf32> to vector<1xf32>
    %218 = vector.shape_cast %217 : vector<1xf32> to vector<1x1x1xf32>
    %219 = vector.extract %218[0, 0, 0] : f32 from vector<1x1x1xf32>
    %c3_i32 = arith.constant 3 : i32
    %220 = vector.broadcast %c3_i32 : i32 to vector<1x128xi32>
    %221 = arith.cmpi eq, %31, %220 : vector<1x128xi32>
    %222 = vector.broadcast %219 : f32 to vector<1x128xf32>
    %223 = arith.maximumf %176, %222 : vector<1x128xf32>
    %224 = arith.select %221, %223, %176 : vector<1x128xi1>, vector<1x128xf32>
    %c0_65 = arith.constant 0 : index
    %c0_66 = arith.constant 0 : index
    %225 = vector.load %arg5[%c0_65, %c0_66] : memref<1x128xf32, #tpu.memory_space<vmem>>, vector<1x128xf32>
    tpu.vector_store %arg5[%c0_65, %c0_66], %224 {strides = array<i32>} : memref<1x128xf32, #tpu.memory_space<vmem>>, vector<1x128xf32>,
    %c0_i32_67 = arith.constant 0 : i32
    %226 = arith.cmpi eq, %arg0, %c0_i32_67 : i32
    %227 = arith.extui %226 : i1 to i32
    %c0_i32_68 = arith.constant 0 : i32
    %228 = arith.cmpi ne, %227, %c0_i32_68 : i32
    scf.if %228 {
      %c0_69 = arith.constant 0 : index
      %229 = memref.load %arg4[%c0_69] : memref<1xi32, #tpu.memory_space<smem>>
      %230 = vector.broadcast %229 : i32 to vector<1x128xi32>
      %231 = arith.cmpi slt, %31, %230 : vector<1x128xi32>
      %c0_70 = arith.constant 0 : index
      %c0_71 = arith.constant 0 : index
      %232 = vector.load %arg5[%c0_70, %c0_71] : memref<1x128xf32, #tpu.memory_space<vmem>>, vector<1x128xf32>
      %cst_72 = arith.constant -2.000000e+00 : f32
      %233 = vector.broadcast %cst_72 : f32 to vector<1x128xf32>
      %234 = arith.select %231, %232, %233 : vector<1x128xi1>, vector<1x128xf32>
      %c0_73 = arith.constant 0 : index
      %c0_74 = arith.constant 0 : index
      %235 = vector.load %arg5[%c0_73, %c0_74] : memref<1x128xf32, #tpu.memory_space<vmem>>, vector<1x128xf32>
      tpu.vector_store %arg5[%c0_73, %c0_74], %234 {strides = array<i32>} : memref<1x128xf32, #tpu.memory_space<vmem>>, vector<1x128xf32>,
    } else {
    }
    return
  }
  func.func @transform_0(%arg0: i32) -> (i32, i32, i32) {
    %c0_i32 = arith.constant 0 : i32
    %c0_i32_0 = arith.constant 0 : i32
    %c0_i32_1 = arith.constant 0 : i32
    return %c0_i32, %arg0, %c0_i32_0 : i32, i32, i32
  }
  func.func @transform_1(%arg0: i32) -> i32 {
    %c0_i32 = arith.constant 0 : i32
    %c0_i32_0 = arith.constant 0 : i32
    return %c0_i32 : i32
  }
  func.func @transform_2(%arg0: i32) -> i32 {
    %c0_i32 = arith.constant 0 : i32
    %c0_i32_0 = arith.constant 0 : i32
    return %c0_i32 : i32
  }
  func.func @transform_3(%arg0: i32) -> i32 {
    %c0_i32 = arith.constant 0 : i32
    %c0_i32_0 = arith.constant 0 : i32
    return %c0_i32 : i32
  }
  func.func @transform_4(%arg0: i32) -> (i32, i32) {
    %c0_i32 = arith.constant 0 : i32
    %c0_i32_0 = arith.constant 0 : i32
    %c0_i32_1 = arith.constant 0 : i32
    return %c0_i32, %c0_i32_0 : i32, i32
  }
}

</mosaic_0001>

<bundles_post_ra>
// kernel: _anchor_data_core.2
= control target key start
LH: loop header
LB: loop body
LE: loop exit
PB: predicated region body
PF: predicated region fallthrough
CT: control target
= control target key end

     0   :  { %10 = vsyncpa [#allocation4], 0  ;;  %s1045_s0 = inlined_call_operand.hbm [shape: f32[4,24,128], index: 0, kind: input, shape index: {}]   ;;  %s1046_s1 = inlined_call_operand.hbm [shape: f32[16], index: 1, kind: input, shape index: {}]   ;;  %s1047_s2 = inlined_call_operand.hbm [shape: f32[2], index: 2, kind: input, shape index: {}]   ;;  %s1048_s3 = inlined_call_operand.<no memory space> [shape: s32[1], index: 3, kind: input, shape index: {}]   ;;  %s1049_s4 = inlined_call_operand.vmem [shape: f32[1,128], index: 4, kind: output, shape index: {}]  }
   0x1   :  { %11 = vsyncpa [#allocation5], 0 }
   0x2   :  { %12 = vsyncpa [#allocation8], 0  ;;  %s567_s15 = smov [#allocation3]   ;;  %s519_s19 = scalar_lea.hbm %s1045_s0, 1536 }
   0x3   :  { %s18_s16 = sshll.u32 %s567_s15, 4  ;;  %p520_p0 = scmp.ne.s32.totalorder %s1045_s0, %s519_s19  ;;  %s19_s16 = int_to_ptr.vmem [resolvable:$true] %s18_s16 }
   0x4   :  { %p523_p1 = scmp.lt.u32.totalorder %s519_s19, %s1045_s0 }
   0x6   :  { %p525_p2 = pnand %p523_p1, %p520_p0 }
   0x8   :  { %528 = shalt.err (!%p525_p2)
}
   0x9   :  { %s529_s24 = scalar_lea.vmem %s19_s16, 1536  ;;  %p534_p4 = scmp.lt.s32.totalorder %s19_s16, %s19_s16 }
   0xa   :  { %p530_p3 = scmp.ne.s32.totalorder %s19_s16, %s529_s24  ;;  %p535_p5 = scmp.lt.s32.totalorder %s529_s24, %s529_s24 }
   0xc   :  { %p536_p6 = por %p535_p5, %p534_p4 }
   0xe   :  { %p537_p7 = pnand %p536_p6, %p530_p3 }
  0x10   :  { %540 = shalt.err (!%p537_p7)
}
  0x11   :  { %s568_s25 = smov 128   ;;  %s569_s26 = smov 8  }
  0x12   :  { %24 = dma.hbm_to_vmem [thread:$0]  %s1045_s0, 1536, %s19_s16, [#allocation4], %s568_s25, %s568_s25, %s569_s26  }
  0x13   :  { %s541_s5 = scalar_lea.hbm %s1046_s1, 16 }
  0x14   :  { %p542_p8 = scmp.ne.s32.totalorder %s1046_s1, %s541_s5  ;;  %p545_p9 = scmp.lt.u32.totalorder %s541_s5, %s1046_s1 }
  0x16   :  { %p547_p10 = pnand %p545_p9, %p542_p8 }
  0x18   :  { %550 = shalt.err (!%p547_p10)
}
  0x19   :  { %s570_s10 = smov [#allocation6]   ;;  %s551_s14 = scalar_lea.hbm %s1047_s2, 16 }
  0x1a   :  { %32 = dma.hbm_to_smem %s1046_s1, 16, %s570_s10, [#allocation5]  }
  0x1b   :  { %p552_p11 = scmp.ne.s32.totalorder %s1047_s2, %s551_s14  ;;  %p555_p12 = scmp.lt.u32.totalorder %s551_s14, %s1047_s2 }
  0x1d   :  { %p557_p13 = pnand %p555_p12, %p552_p11 }
  0x1f   :  { %560 = shalt.err (!%p557_p13)
}
  0x20   :  { %s571_s19 = smov [#allocation7]  }
  0x21   :  { %40 = dma.hbm_to_smem %s1047_s2, 16, %s571_s19, [#allocation8]  }
  0x22   :  { %561 = dma.done.wait [#allocation4], 1536  }
  0x23   :  { %562 = vsyncadd [#allocation4], 4294965760 }
  0x24   :  { %563 = dma.done.wait [#allocation5], 16  }
  0x25   :  { %564 = vsyncadd [#allocation5], 4294967280 }
  0x26   :  { %565 = dma.done.wait [#allocation8], 16  }
  0x27   :  { %566 = vsyncadd [#allocation8], 4294967280 }
  0x28   :  { %52 = sfence }
  0x29   :  { %v634_v0 = vld [vmem:[#allocation3] sm:$0xff]  ;;  %v636_v1 = vld [vmem:[#allocation3 + $0x8] sm:$0xff]  ;;  %s73_s1 = sld [smem:[#allocation7]]  ;;  %v638_v2 = vld [vmem:[#allocation3 + $0x10] sm:$0xff]  ;;  %s461_s2 = sld [smem:[#allocation7 + $0x1]] }
  0x2a   :  { %v640_v3 = vld [vmem:[#allocation3 + $0x18] sm:$0xff]  ;;  %v642_v4 = vld [vmem:[#allocation3 + $0x20] sm:$0xff]  ;;  %v644_v5 = vld [vmem:[#allocation3 + $0x28] sm:$0xff]  ;;  %s670_s22 = sld [smem:[#allocation6 + $0x8]]  ;;  %s672_s23 = sld [smem:[#allocation6 + $0x9]]  ;;  %vm75_vm0 = vcmp.ge.f32.partialorder %v634_v0, 0.0 }
  0x2b   :  { %v646_v6 = vld [vmem:[#allocation3 + $0x30] sm:$0xff]  ;;  %v648_v7 = vld [vmem:[#allocation3 + $0x38] sm:$0xff]  ;;  %v650_v8 = vld [vmem:[#allocation3 + $0x40] sm:$0xff]  ;;  %s674_s24 = sld [smem:[#allocation6 + $0xa]]  ;;  %s676_s25 = sld [smem:[#allocation6 + $0xb]]  ;;  %vm78_vm1 = vcmp.ge.f32.partialorder %v640_v3, 0.0 }
  0x2c   :  { %v652_v9 = vld [vmem:[#allocation3 + $0x48] sm:$0xff]  ;;  %v654_v10 = vld [vmem:[#allocation3 + $0x50] sm:$0xff]  ;;  %v656_v11 = vld [vmem:[#allocation3 + $0x58] sm:$0xff]  ;;  %v98_v12 = vsub.f32 %v646_v6, %v634_v0  ;;  %v99_v13 = vsub.f32 %v648_v7, %v636_v1  ;;  %v100_v14 = vsub.f32 %v650_v8, %v638_v2  ;;  %s678_s26 = sld [smem:[#allocation6]]  ;;  %s680_s27 = sld [smem:[#allocation6 + $0x2]]  ;;  %vm76_vm2 = vcmp.ge.f32.partialorder %v636_v1, 0.0 }
  0x2d   :  { %v104_v15 = vsub.f32 %v652_v9, %v640_v3  ;;  %v105_v16 = vsub.f32 %v654_v10, %v642_v4  ;;  %v106_v17 = vsub.f32 %v656_v11, %v644_v5  ;;  %s688_s28 = sld [smem:[#allocation6 + $0x1]]  ;;  %s696_s29 = sld [smem:[#allocation6 + $0x3]]  ;;  %vm79_vm3 = vcmp.ge.f32.partialorder %v642_v4, 0.0  ;;  %vm836_vm12 = vmand %vm75_vm0, %vm78_vm1 }
  0x2e   :  { %v101_v18 = vadd.f32 1.0, %v98_v12  ;;  %v102_v19 = vadd.f32 1.0, %v99_v13  ;;  %v103_v20 = vadd.f32 1.0, %v100_v14  ;;  %s698_s30 = sld [smem:[#allocation6 + $0xc]]  ;;  %s706_s6 = sld [smem:[#allocation6 + $0xe]]  ;;  %vm77_vm4 = vcmp.ge.f32.partialorder %v638_v2, 0.0  ;;  %vm847_vm13 = vmand %vm76_vm2, %vm79_vm3 }
  0x2f   :  { %v107_v21 = vadd.f32 1.0, %v104_v15  ;;  %v108_v22 = vadd.f32 1.0, %v105_v16  ;;  %v109_v23 = vadd.f32 1.0, %v106_v17  ;;  %v682_v24 = vstv %s73_s1  ;;  %s720_s9 = sld [smem:[#allocation6 + $0xd]]  ;;  %s725_s11 = sld [smem:[#allocation6 + $0xf]] }
  0x30   :  { %v684_v25 = vstv %s461_s2  ;;  %v298_v29 = vstv %s670_s22  ;;  %v312_v30 = vstv %s672_s23  ;;  %vm80_vm5 = vcmp.ge.f32.partialorder %v644_v5, 0.0  ;;  %s786_s19 = sld [smem:[#allocation6 + $0x4]]  ;;  %s811_s1 = sld [smem:[#allocation6 + $0x6]] }
  0x31   :  { %v686_v26 = vmul.f32 %v107_v21, %v101_v18  ;;  %v690_v27 = vmul.f32 %v108_v22, %v102_v19  ;;  %v692_v28 = vmul.f32 %v109_v23, %v103_v20  ;;  %s284_s5 = ssub.f32 %s674_s24, %s670_s22  ;;  %v294_v31 = vstv %s674_s24  ;;  %s825_s2 = sld [smem:[#allocation6 + $0x5]]  ;;  %vm859_vm14 = vmand %vm77_vm4, %vm80_vm5 }
  0x32   :  { %v299_v32 = vmax.f32 %v634_v0, %v298_v29  ;;  %v300_v33 = vmax.f32 %v636_v1, %v298_v29  ;;  %v301_v34 = vmax.f32 %v638_v2, %v298_v29  ;;  %s286_s7 = ssub.f32 %s676_s25, %s672_s23  ;;  %v295_v35 = vmin.f32 %v646_v6, %v294_v31  ;;  %s827_s22 = sld [smem:[#allocation6 + $0x7]] }
  0x33   :  { %v296_v36 = vmin.f32 %v648_v7, %v294_v31  ;;  %v297_v37 = vmin.f32 %v650_v8, %v294_v31  ;;  %v308_v38 = vstv %s676_s25  ;;  %s714_s8 = sadd.f32 1.0, %s284_s5  ;;  %v313_v42 = vmax.f32 %v640_v3, %v312_v30 }
  0x34   :  { %v309_v39 = vmin.f32 %v652_v9, %v308_v38  ;;  %v310_v40 = vmin.f32 %v654_v10, %v308_v38  ;;  %v311_v41 = vmin.f32 %v656_v11, %v308_v38  ;;  %s722_s10 = sadd.f32 1.0, %s286_s7  ;;  %v302_v43 = vsub.f32 %v295_v35, %v299_v32 }
  0x35   :  { %v303_v44 = vsub.f32 %v296_v36, %v300_v33  ;;  %v304_v45 = vsub.f32 %v297_v37, %v301_v34  ;;  %v314_v46 = vmax.f32 %v642_v4, %v312_v30  ;;  %p288_p0 = scmp.gt.f32.partialorder %s714_s8, 0.0  ;;  %v315_v47 = vmax.f32 %v644_v5, %v312_v30  ;;  %s120_s12 = ssub.f32 %s680_s27, %s678_s26 }
  0x36   :  { %v316_v48 = vsub.f32 %v309_v39, %v313_v42  ;;  %v130_v49 = vstv %s680_s27  ;;  %v134_v50 = vstv %s678_s26  ;;  %p289_p1 = scmp.gt.f32.partialorder %s722_s10, 0.0  ;;  %s292_s0 = smul.f32 %s722_s10, %s714_s8  ;;  %v305_v51 = vadd.f32 1.0, %v302_v43 }
  0x37   :  { %v306_v52 = vadd.f32 1.0, %v303_v44  ;;  %v307_v53 = vadd.f32 1.0, %v304_v45  ;;  %v317_v54 = vsub.f32 %v310_v40, %v314_v46  ;;  %v318_v55 = vsub.f32 %v311_v41, %v315_v47  ;;  %s736_s13 = sadd.f32 1.0, %s120_s12 }
  0x38   :  { %v319_v56 = vadd.f32 1.0, %v316_v48  ;;  %v131_v57 = vmin.f32 %v646_v6, %v130_v49  ;;  %v132_v58 = vmin.f32 %v648_v7, %v130_v49  ;;  %p290_p2 = pnand %p289_p1, %p288_p0  ;;  %v322_v60 = vmax.f32 %v305_v51, 0.0  ;;  %s122_s14 = ssub.f32 %s696_s29, %s688_s28 }
  0x39   :  { %v320_v59 = vadd.f32 1.0, %v317_v54  ;;  %v323_v61 = vmax.f32 %v306_v52, 0.0  ;;  %v324_v62 = vmax.f32 %v307_v53, 0.0  ;;  %v321_v63 = vadd.f32 1.0, %v318_v55  ;;  %s366_s15 = ssub.f32 %s706_s6, %s698_s30  ;;  %p124_p3 = scmp.gt.f32.partialorder %s736_s13, 0.0 }
  0x3a   :  { %v325_v12 = vmax.f32 %v319_v56, 0.0  ;;  %v133_v13 = vmin.f32 %v650_v8, %v130_v49  ;;  %v135_v14 = vmax.f32 %v634_v0, %v134_v50  ;;  %s1071_s0 = smov (%p290_p2, %s292_s0), 0.0  ;;  %v136_v16 = vmax.f32 %v636_v1, %v134_v50  ;;  %s757_s16 = sadd.f32 1.0, %s122_s14 }
  0x3b   :  { %v326_v15 = vmax.f32 %v320_v59, 0.0  ;;  %v137_v17 = vmax.f32 %v638_v2, %v134_v50  ;;  %v144_v18 = vstv %s696_s29  ;;  %v327_v19 = vmax.f32 %v321_v63, 0.0  ;;  %s368_s18 = ssub.f32 %s725_s11, %s720_s9 }
  0x3c   :  { %v755_v20 = vmul.f32 %v325_v12, %v322_v60  ;;  %v138_v21 = vsub.f32 %v131_v57, %v135_v14  ;;  %v145_v22 = vmin.f32 %v652_v9, %v144_v18  ;;  %v331_v29 = vstv %s1071_s0  ;;  %p125_p4 = scmp.gt.f32.partialorder %s757_s16, 0.0  ;;  %s128_s17 = smul.f32 %s757_s16, %s736_s13 }
  0x3d   :  { %v763_v23 = vmul.f32 %v326_v15, %v323_v61  ;;  %v139_v30 = vsub.f32 %v132_v58, %v136_v16  ;;  %v140_v31 = vsub.f32 %v133_v13, %v137_v17  ;;  %vm85_vm6 = vcmp.lt.f32.partialorder %v646_v6, %v682_v24  ;;  %s801_s20 = sadd.f32 1.0, %s366_s15 }
  0x3e   :  { %v767_v32 = vmul.f32 %v327_v19, %v324_v62  ;;  %v332_v33 = vadd.f32 %v331_v29, %v686_v26  ;;  %v333_v34 = vadd.f32 %v331_v29, %v690_v27  ;;  %v334_v35 = vadd.f32 %v331_v29, %v692_v28  ;;  %p126_p5 = pnand %p125_p4, %p124_p3  ;;  %s809_s21 = sadd.f32 1.0, %s368_s18  ;;  %vm869_vm15 = vmand %vm836_vm12, %vm85_vm6 }
  0x3f   :  { %vm86_vm7 = vcmp.lt.f32.partialorder %v648_v7, %v682_v24  ;;  %v777_v36 = vadd.f32 1.0, %v138_v21  ;;  %v779_v37 = vadd.f32 1.0, %v139_v30  ;;  %v781_v38 = vadd.f32 1.0, %v140_v31  ;;  %p370_p6 = scmp.gt.f32.partialorder %s801_s20, 0.0  ;;  %s202_s23 = ssub.f32 %s811_s1, %s786_s19 }
  0x40   :  { %v146_v39 = vmin.f32 %v654_v10, %v144_v18  ;;  %vm87_vm8 = vcmp.lt.f32.partialorder %v650_v8, %v682_v24  ;;  %v335_v40 = vsub.f32 %v332_v33, %v755_v20  ;;  %v336_v41 = vsub.f32 %v333_v34, %v763_v23  ;;  %s1073_s17 = smov (%p126_p5, %s128_s17), 0.0  ;;  %p371_p7 = scmp.gt.f32.partialorder %s809_s21, 0.0  ;;  %vm884_vm0 = vmand %vm847_vm13, %vm86_vm7 }
  0x41   :  { %v337_v42 = vsub.f32 %v334_v35, %v767_v32  ;;  %v147_v43 = vmin.f32 %v656_v11, %v144_v18  ;;  %vm92_vm9 = vcmp.lt.f32.partialorder %v652_v9, %v684_v25  ;;  %v148_v44 = vstv %s688_s28  ;;  %s374_s25 = smul.f32 %s809_s21, %s801_s20  ;;  %vm909_vm1 = vmand %vm859_vm14, %vm87_vm8  ;;  %s204_s26 = ssub.f32 %s827_s22, %s825_s2 }
  0x42   :  { %v158_v45 = vmax.f32 %v777_v36, 0.0  ;;  %v159_v46 = vmax.f32 %v779_v37, 0.0  ;;  %v160_v47 = vmax.f32 %v781_v38, 0.0  ;;  %vm93_vm10 = vcmp.lt.f32.partialorder %v654_v10, %v684_v25  ;;  %p898_p8 = pnand %p371_p7, %p370_p6  ;;  %vm923_vm2 = vmand %vm869_vm15, %vm92_vm9  ;;  %s943_s27 = sadd.f32 1.0, %s202_s23 }
  0x43   :  { %495 = vrcp.f32 %v335_v40  ;;  %v149_v48 = vmax.f32 %v640_v3, %v148_v44  ;;  %v150_v49 = vmax.f32 %v642_v4, %v148_v44  ;;  %v151_v50 = vmax.f32 %v644_v5, %v148_v44  ;;  %vm935_vm3 = vmand %vm884_vm0, %vm93_vm10  ;;  %s960_s28 = sadd.f32 1.0, %s204_s26 }
  0x44   :  { %vm94_vm11 = vcmp.lt.f32.partialorder %v656_v11, %v684_v25  ;;  %497 = vrcp.f32 %v336_v41  ;;  %v376_v51 = vstv %s706_s6  ;;  %v380_v52 = vstv %s698_s30  ;;  %s1075_s25 = smov (%p898_p8, %s374_s25), 0.0  ;;  %p206_p9 = scmp.gt.f32.partialorder %s943_s27, 0.0 }
  0x45   :  { %v823_v53 = vstv %s725_s11  ;;  %499 = vrcp.f32 %v337_v42  ;;  %v152_v54 = vsub.f32 %v145_v22, %v149_v48  ;;  %v153_v55 = vsub.f32 %v146_v39, %v150_v49  ;;  %vm950_vm4 = vmand %vm909_vm1, %vm94_vm11  ;;  %p207_p10 = scmp.gt.f32.partialorder %s960_s28, 0.0  ;;  %s210_s30 = smul.f32 %s960_s28, %s943_s27 }
  0x46   :  { %v154_v56 = vsub.f32 %v147_v43, %v151_v50  ;;  %v167_v57 = vstv %s1073_s17  ;;  %v377_v58 = vmin.f32 %v646_v6, %v376_v51  ;;  %v378_v59 = vmin.f32 %v648_v7, %v376_v51 }
  0x47   :  { %v379_v60 = vmin.f32 %v650_v8, %v376_v51  ;;  %v155_v62 = vadd.f32 1.0, %v152_v54  ;;  %v156_v63 = vadd.f32 1.0, %v153_v55  ;;  %v168_v13 = vadd.f32 %v167_v57, %v686_v26  ;;  %p984_p11 = pnand %p207_p10, %p206_p9 }
  0x48   :  { %v157_v12 = vadd.f32 1.0, %v154_v56  ;;  %v169_v15 = vadd.f32 %v167_v57, %v690_v27  ;;  %v170_v16 = vadd.f32 %v167_v57, %v692_v28  ;;  %v381_v17 = vmax.f32 %v634_v0, %v380_v52 }
  0x49   :  { %v382_v18 = vmax.f32 %v636_v1, %v380_v52  ;;  %v161_v21 = vmax.f32 %v155_v62, 0.0  ;;  %v162_v22 = vmax.f32 %v156_v63, 0.0  ;;  %v383_v30 = vmax.f32 %v638_v2, %v380_v52  ;;  %s1077_s30 = smov (%p984_p11, %s210_s30), 0.0 }
  0x4a   :  { %v163_v29 = vmax.f32 %v157_v12, 0.0  ;;  %v384_v33 = vsub.f32 %v377_v58, %v381_v17  ;;  %v391_v35 = vmin.f32 %v652_v9, %v823_v53  ;;  %v392_v36 = vmin.f32 %v654_v10, %v823_v53 }
  0x4b   :  { %v385_v34 = vsub.f32 %v378_v59, %v382_v18  ;;  %v888_v38 = vmul.f32 %v161_v21, %v158_v45  ;;  %v890_v39 = vmul.f32 %v162_v22, %v159_v46  ;;  %v386_v41 = vsub.f32 %v379_v60, %v383_v30 }
  0x4c   :  { %v892_v40 = vmul.f32 %v163_v29, %v160_v47  ;;  %v387_v43 = vadd.f32 1.0, %v384_v33  ;;  %v393_v45 = vmin.f32 %v656_v11, %v823_v53  ;;  %v394_v46 = vstv %s720_s9 }
  0x4d   :  { %v388_v44 = vadd.f32 1.0, %v385_v34  ;;  %v496_v47 = vpop.eup %495  ;;  %v171_v48 = vsub.f32 %v168_v13, %v888_v38  ;;  %v172_v49 = vsub.f32 %v169_v15, %v890_v39  ;;  %v389_v51 = vadd.f32 1.0, %v386_v41 }
  0x4e   :  { %v173_v50 = vsub.f32 %v170_v16, %v892_v40  ;;  %v498_v52 = vpop.eup %497  ;;  %v341_v54 = vmul.f32 %v496_v47, %v755_v20  ;;  %v395_v55 = vmax.f32 %v640_v3, %v394_v46  ;;  %v396_v56 = vmax.f32 %v642_v4, %v394_v46 }
  0x4f   :  { %v397_v57 = vmax.f32 %v644_v5, %v394_v46  ;;  %v500_v58 = vpop.eup %499  ;;  %v342_v20 = vmul.f32 %v498_v52, %v763_v23  ;;  %501 = vrcp.f32 %v171_v48  ;;  %v404_v60 = vmax.f32 %v387_v43, 0.0 }
  0x50   :  { %v405_v61 = vmax.f32 %v388_v44, 0.0  ;;  %v343_v62 = vmul.f32 %v500_v58, %v767_v32  ;;  %v344_v63 = vsel %vm923_vm2, %v341_v54, -1.0  ;;  %503 = vrcp.f32 %v172_v49 }
  0x51   :  { %v398_v25 = vsub.f32 %v391_v35, %v395_v55  ;;  %v345_v12 = vsel %vm935_vm3, %v342_v20, -1.0  ;;  %505 = vrcp.f32 %v173_v50  ;;  %v399_v23 = vsub.f32 %v392_v36, %v396_v56 }
  0x52   :  { %v400_v13 = vsub.f32 %v393_v45, %v397_v57  ;;  %v346_v14 = vsel %vm950_vm4, %v343_v62, -1.0  ;;  %v347_v32 = vmax.f32 %v344_v63, %v345_v12  ;;  %v406_v16 = vmax.f32 %v389_v51, 0.0 }
  0x53   :  { %v401_v15 = vadd.f32 1.0, %v398_v25  ;;  %v402_v17 = vadd.f32 1.0, %v399_v23  ;;  %v413_v19 = vstv %s1075_s25  ;;  %v212_v21 = vstv %s811_s1 }
  0x54   :  { %v403_v18 = vadd.f32 1.0, %v400_v13  ;;  %v348_v22 = vmax.f32 %v347_v32, %v346_v14  ;;  %v414_v30 = vadd.f32 %v413_v19, %v686_v26  ;;  %v415_v31 = vadd.f32 %v413_v19, %v690_v27 }
  0x55   :  { %v407_v29 = vmax.f32 %v401_v15, 0.0  ;;  %v408_v33 = vmax.f32 %v402_v17, 0.0  ;;  %v416_v35 = vadd.f32 %v413_v19, %v692_v28  ;;  %v213_v36 = vmin.f32 %v646_v6, %v212_v21 }
  0x56   :  { %v409_v34 = vmax.f32 %v403_v18, 0.0  ;;  %349 = vmax.xlane.f32.xlu1 %v348_v22  ;;  %v214_v41 = vmin.f32 %v648_v7, %v212_v21  ;;  %v215_v42 = vmin.f32 %v650_v8, %v212_v21  ;;  %v216_v43 = vstv %s786_s19 }
  0x57   :  { %v410_v37 = vmul.f32 %v407_v29, %v404_v60  ;;  %v411_v44 = vmul.f32 %v408_v33, %v405_v61  ;;  %v217_v46 = vmax.f32 %v634_v0, %v216_v43  ;;  %v218_v47 = vmax.f32 %v636_v1, %v216_v43 }
  0x58   :  { %v976_v45 = vmul.f32 %v409_v34, %v406_v16  ;;  %v219_v6 = vmax.f32 %v638_v2, %v216_v43  ;;  %v226_v7 = vstv %s827_s22  ;;  %v230_v8 = vstv %s825_s2 }
  0x59   :  { %v417_v48 = vsub.f32 %v414_v30, %v410_v37  ;;  %v502_v49 = vpop.eup %501  ;;  %v418_v50 = vsub.f32 %v415_v31, %v411_v44  ;;  %v220_v0 = vsub.f32 %v213_v36, %v217_v46  ;;  %v221_v52 = vsub.f32 %v214_v41, %v218_v47 }
  0x5a   :  { %v419_v51 = vsub.f32 %v416_v35, %v976_v45  ;;  %v504_v1 = vpop.eup %503  ;;  %v177_v54 = vmul.f32 %v502_v49, %v888_v38  ;;  %v222_v55 = vsub.f32 %v215_v42, %v219_v6  ;;  %v227_v56 = vmin.f32 %v652_v9, %v226_v7 }
  0x5b   :  { %507 = vrcp.f32 %v417_v48  ;;  %v506_v57 = vpop.eup %505  ;;  %v178_v58 = vmul.f32 %v504_v1, %v890_v39  ;;  %v223_v2 = vadd.f32 1.0, %v220_v0  ;;  %v224_v20 = vadd.f32 1.0, %v221_v52 }
  0x5c   :  { %509 = vrcp.f32 %v418_v50  ;;  %v179_v60 = vmul.f32 %v506_v57, %v892_v40  ;;  %v180_v61 = vsel %vm923_vm2, %v177_v54, -1.0  ;;  %v225_v62 = vadd.f32 1.0, %v222_v55 }
  0x5d   :  { %511 = vrcp.f32 %v419_v51  ;;  %v181_v38 = vsel %vm935_vm3, %v178_v58, -1.0  ;;  %v228_v9 = vmin.f32 %v654_v10, %v226_v7  ;;  %v229_v63 = vmin.f32 %v656_v11, %v226_v7 }
  0x5e   :  { %v231_v39 = vmax.f32 %v640_v3, %v230_v8  ;;  %v182_v25 = vsel %vm950_vm4, %v179_v60, -1.0  ;;  %v183_v40 = vmax.f32 %v180_v61, %v181_v38  ;;  %v232_v12 = vmax.f32 %v642_v4, %v230_v8 }
  0x5f   :  { %v233_v23 = vmax.f32 %v644_v5, %v230_v8  ;;  %v249_v16 = vstv %s1077_s30  ;;  %v240_v18 = vmax.f32 %v223_v2, 0.0  ;;  %v241_v19 = vmax.f32 %v224_v20, 0.0 }
  0x60   :  { %v234_v13 = vsub.f32 %v227_v56, %v231_v39  ;;  %v184_v14 = vmax.f32 %v183_v40, %v182_v25  ;;  %v235_v32 = vsub.f32 %v228_v9, %v232_v12  ;;  %v242_v3 = vmax.f32 %v225_v62, 0.0 }
  0x61   :  { %v236_v15 = vsub.f32 %v229_v63, %v233_v23  ;;  %v250_v22 = vadd.f32 %v249_v16, %v686_v26  ;;  %v251_v5 = vadd.f32 %v249_v16, %v690_v27  ;;  %v252_v31 = vadd.f32 %v249_v16, %v692_v28 }
  0x62   :  { %v237_v17 = vadd.f32 1.0, %v234_v13  ;;  %185 = vmax.xlane.f32.xlu0 %v184_v14  ;;  %v238_v10 = vadd.f32 1.0, %v235_v32  ;;  %v572_v56 = vmov -2.0  }
  0x63   :  { %v239_v11 = vadd.f32 1.0, %v236_v15  ;;  %57 = vst [vmem:[%s1049_s4] sm:$0x1] %v572_v56 }
  0x64   :  { %v243_v21 = vmax.f32 %v237_v17, 0.0  ;;  %v244_v30 = vmax.f32 %v238_v10, 0.0 }
  0x65   :  { %v508_v29 = vpop.eup %507  ;;  %v245_v4 = vmax.f32 %v239_v11, 0.0 }
  0x66   :  { %v510_v33 = vpop.eup %509  ;;  %v423_v34 = vmul.f32 %v508_v29, %v410_v37  ;;  %v246_v35 = vmul.f32 %v243_v21, %v240_v18  ;;  %v247_v42 = vmul.f32 %v244_v30, %v241_v19 }
  0x67   :  { %v512_v36 = vpop.eup %511  ;;  %v424_v41 = vmul.f32 %v510_v33, %v411_v44  ;;  %v248_v43 = vmul.f32 %v245_v4, %v242_v3  ;;  %v113_v3 = vlaneseq }
  0x68   :  { %v425_v46 = vmul.f32 %v512_v36, %v976_v45  ;;  %v426_v47 = vsel %vm923_vm2, %v423_v34, -1.0  ;;  %v253_v26 = vsub.f32 %v250_v22, %v246_v35  ;;  %v254_v6 = vsub.f32 %v251_v5, %v247_v42 }
  0x69   :  { %v427_v48 = vsel %vm935_vm3, %v424_v41, -1.0  ;;  %v255_v27 = vsub.f32 %v252_v31, %v248_v43  ;;  %v114_v29 = vand.u32 127, %v113_v3 }
  0x6a   :  { %v428_v28 = vsel %vm950_vm4, %v425_v46, -1.0  ;;  %v429_v37 = vmax.f32 %v426_v47, %v427_v48  ;;  %513 = vrcp.f32 %v253_v26  ;;  %v115_v21 = vld [vmem:[%s1049_s4] sm:$0x1]  ;;  %v449_v46 = vstv %s1048_s3 }
  0x6b   :  { %515 = vrcp.f32 %v254_v6  ;;  %vm194_vm5 = vcmp.eq.s32.totalorder %v114_v29, 0  ;;  %vm276_vm6 = vcmp.eq.s32.totalorder %v114_v29, 1  ;;  %vm358_vm7 = vcmp.eq.s32.totalorder %v114_v29, 2 }
  0x6c   :  { %v430_v44 = vmax.f32 %v429_v37, %v428_v28  ;;  %517 = vrcp.f32 %v255_v27  ;;  %vm440_vm8 = vcmp.eq.s32.totalorder %v114_v29, 3  ;;  %vm450_vm9 = vcmp.lt.s32.totalorder %v114_v29, %v449_v46 }
  0x6e   :  { %431 = vmax.xlane.f32.xlu1 %v430_v44 }
  0x74   :  { %v514_v7 = vpop.eup %513 }
  0x75   :  { %v516_v45 = vpop.eup %515  ;;  %v259_v8 = vmul.f32 %v514_v7, %v246_v35 }
  0x76   :  { %v518_v49 = vpop.eup %517  ;;  %v260_v50 = vmul.f32 %v516_v45, %v247_v42 }
  0x77   :  { %v261_v51 = vmul.f32 %v518_v49, %v248_v43  ;;  %v262_v0 = vsel %vm923_vm2, %v259_v8, -1.0 }
  0x78   :  { %v263_v52 = vsel %vm935_vm3, %v260_v50, -1.0 }
  0x79   :  { %v264_v1 = vsel %vm950_vm4, %v261_v51, -1.0  ;;  %v265_v54 = vmax.f32 %v262_v0, %v263_v52 }
  0x7b   :  { %v266_v55 = vmax.f32 %v265_v54, %v264_v1 }
  0x7d   :  { %267 = vmax.xlane.f32.xlu0 %v266_v55 }
  0xe3   :  { %v350_v60 = vpop.xlane.xlu1 %349 }
  0xe4   :  { %v351_v38 = vrot.slane %v350_v60, 4 }
  0xe6   :  { %v352_v63 = vmax.f32 %v350_v60, %v351_v38 }
  0xe8   :  { %v353_v25 = vrot.slane %v352_v63, 2 }
  0xea   :  { %v354_v14 = vmax.f32 %v352_v63, %v353_v25 }
  0xec   :  { %v355_v17 = vrot.slane %v354_v14, 1 }
  0xee   :  { %v356_v19 = vmax.f32 %v354_v14, %v355_v17 }
  0xef   :  { %v186_v57 = vpop.xlane.xlu0 %185 }
  0xf0   :  { %v187_v58 = vrot.slane %v186_v57, 4 }
  0xf2   :  { %v188_v2 = vmax.f32 %v186_v57, %v187_v58 }
  0xf4   :  { %v189_v20 = vrot.slane %v188_v2, 2 }
  0xf6   :  { %v190_v24 = vmax.f32 %v188_v2, %v189_v20 }
  0xf8   :  { %v191_v61 = vrot.slane %v190_v24, 1 }
  0xfa   :  { %v192_v53 = vmax.f32 %v190_v24, %v191_v61 }
  0xfb   :  { %v432_v62 = vpop.xlane.xlu1 %431 }
  0xfc   :  { %481 = vpush %v192_v53  ;;  %v433_v59 = vrot.slane %v432_v62, 4 }
  0xfe   :  { %v434_v9 = vmax.f32 %v432_v62, %v433_v59 }
 0x100   :  { %v435_v39 = vrot.slane %v434_v9, 2 }
 0x102   :  { %v436_v23 = vmax.f32 %v434_v9, %v435_v39 }
 0x104   :  { %v437_v16 = vrot.slane %v436_v23, 1 }
 0x106   :  { %v438_v11 = vmax.f32 %v436_v23, %v437_v16 }
 0x10a   :  { %v268_v40 = vpop.xlane.xlu0 %267 }
 0x10b   :  { %v269_v12 = vrot.slane %v268_v40, 4 }
 0x10d   :  { %v270_v13 = vmax.f32 %v268_v40, %v269_v12 }
 0x10f   :  { %v271_v32 = vrot.slane %v270_v13, 2 }
 0x111   :  { %v272_v15 = vmax.f32 %v270_v13, %v271_v32 }
 0x113   :  { %v273_v18 = vrot.slane %v272_v15, 1 }
 0x115   :  { %v274_v10 = vmax.f32 %v272_v15, %v273_v18 }
 0x117   :  { %483 = vpush %v274_v10 }
 0x118   :  { %485 = vpush %v356_v19 }
 0x119   :  { %487 = vpush %v438_v11 }
 0x12d   :  { %s482_s7 = spop %481 }
 0x12e   :  { %v195_v22 = vstv %s482_s7 }
 0x12f   :  { %v196_v30 = vmax.f32 %v115_v21, %v195_v22 }
 0x131   :  { %v197_v4 = vsel %vm194_vm5, %v196_v30, %v115_v21 }
 0x148   :  { %s484_s10 = spop %483 }
 0x149   :  { %v277_v5 = vstv %s484_s10  ;;  %s486_s11 = spop %485 }
 0x14a   :  { %v278_v31 = vmax.f32 %v197_v4, %v277_v5  ;;  %v359_v34 = vstv %s486_s11  ;;  %s488_s12 = spop %487 }
 0x14b   :  { %v441_v41 = vstv %s488_s12 }
 0x14c   :  { %v279_v33 = vsel %vm276_vm6, %v278_v31, %v197_v4 }
 0x14d   :  { %v360_v35 = vmax.f32 %v279_v33, %v359_v34 }
 0x14f   :  { %v361_v36 = vsel %vm358_vm7, %v360_v35, %v279_v33 }
 0x150   :  { %v442_v42 = vmax.f32 %v361_v36, %v441_v41 }
 0x152   :  { %v443_v43 = vsel %vm440_vm8, %v442_v42, %v361_v36 }
 0x153   :  { %444 = vst [vmem:[%s1049_s4] sm:$0x1] %v443_v43 }
 0x15a   :  { %v451_v47 = vld [vmem:[%s1049_s4] sm:$0x1] }
 0x15b   :  { %v452_v26 = vsel %vm450_vm9, %v451_v47, -2.0 }
 0x15c   :  { %453 = vst [vmem:[%s1049_s4] sm:$0x1] %v452_v26 }
 0x15d   :  { %458 = vsyncpa [#allocation4], 1 }
 0x15e   :  { %459 = vsyncpa [#allocation5], 1 }
 0x15f   :  { %460 = vsyncpa [#allocation8], 1 }

// kernel: _anchor_data_core.3
= control target key start
LH: loop header
LB: loop body
LE: loop exit
PB: predicated region body
PF: predicated region fallthrough
CT: control target
= control target key end

     0   :  { %11 = vsyncpa [#allocation3], 0  ;;  %s1856_s0 = inlined_call_operand.vmem [shape: f32[4,24,128], index: 0, kind: input, shape index: {}]   ;;  %s1857_s1 = inlined_call_operand.vmem [shape: f32[16], index: 1, kind: input, shape index: {}]   ;;  %s1858_s2 = inlined_call_operand.vmem [shape: f32[2], index: 2, kind: input, shape index: {}]   ;;  %s1859_s3 = inlined_call_operand.vmem [shape: f32[128], index: 3, kind: input, shape index: {}]   ;;  %s1860_s4 = inlined_call_operand.vmem [shape: f32[4,24,128], index: 4, kind: output, shape index: {0}]   ;;  %s1861_s5 = inlined_call_operand.vmem [shape: f32[24,128], index: 5, kind: output, shape index: {1}]  }
   0x1   :  { %12 = vsyncpa [#allocation5], 0  ;;  %s31_s20 = sshll.u32 %s1858_s2, 4  ;;  %s21_s23 = sshll.u32 %s1857_s1, 4  ;;  %s32_s20 = int_to_ptr.vmem [resolvable:$true] %s31_s20  ;;  %s22_s23 = int_to_ptr.vmem [resolvable:$true] %s21_s23 }
   0x2   :  { %s732_s24 = scalar_lea.vmem %s32_s20, 16  ;;  %p737_p1 = scmp.lt.s32.totalorder %s32_s20, %s32_s20 }
   0x3   :  { %p733_p0 = scmp.ne.s32.totalorder %s32_s20, %s732_s24  ;;  %p738_p2 = scmp.lt.s32.totalorder %s732_s24, %s732_s24 }
   0x5   :  { %p739_p3 = por %p738_p2, %p737_p1 }
   0x7   :  { %p740_p4 = pnand %p739_p3, %p733_p0 }
   0x9   :  { %743 = shalt.err (!%p740_p4)
}
   0xa   :  { %s772_s25 = smov [#allocation4]   ;;  %s744_s26 = scalar_lea.vmem %s22_s23, 16 }
   0xb   :  { %34 = dma.vmem_to_smem %s32_s20, 16, %s772_s25, [#allocation5]  }
   0xc   :  { %p745_p5 = scmp.ne.s32.totalorder %s22_s23, %s744_s26  ;;  %p749_p6 = scmp.lt.s32.totalorder %s22_s23, %s22_s23 }
   0xd   :  { %p750_p7 = scmp.lt.s32.totalorder %s744_s26, %s744_s26 }
   0xf   :  { %p751_p8 = por %p750_p7, %p749_p6 }
  0x11   :  { %p752_p9 = pnand %p751_p8, %p745_p5 }
  0x13   :  { %755 = shalt.err (!%p752_p9)
}
  0x14   :  { %s773_s2 = smov [#allocation2]   ;;  %s41_s28 = sshll.u32 %s1859_s3, 4  ;;  %s42_s28 = int_to_ptr.vmem [resolvable:$true] %s41_s28 }
  0x15   :  { %24 = dma.vmem_to_smem %s22_s23, 16, %s773_s2, [#allocation3]  }
  0x16   :  { %s756_s29 = scalar_lea.vmem %s42_s28, 16  ;;  %p761_p11 = scmp.lt.s32.totalorder %s42_s28, %s42_s28 }
  0x17   :  { %p757_p10 = scmp.ne.s32.totalorder %s42_s28, %s756_s29  ;;  %p762_p12 = scmp.lt.s32.totalorder %s756_s29, %s756_s29 }
  0x19   :  { %p763_p13 = por %p762_p12, %p761_p11 }
  0x1b   :  { %p764_p0 = pnand %p763_p13, %p757_p10 }
  0x1d   :  { %767 = shalt.err (!%p764_p0)
}
  0x1e   :  { %s774_s30 = smov [#allocation6]  }
  0x1f   :  { %44 = dma.vmem_to_smem %s42_s28, 16, %s774_s30, [#allocation5]  }
  0x20   :  { %768 = dma.done.wait [#allocation3], 16  }
  0x21   :  { %769 = vsyncadd [#allocation3], 4294967280 }
  0x22   :  { %770 = dma.done.wait [#allocation5], 32  }
  0x23   :  { %771 = vsyncadd [#allocation5], 4294967264 }
  0x24   :  { %54 = sfence }
  0x25   :  { %v819_v0 = vld [vmem:[%s1856_s0] sm:$0xff]  ;;  %v824_v1 = vld [vmem:[%s1856_s0 + $0x30] sm:$0xff]  ;;  %s70_s9 = sld [smem:[#allocation4]]  ;;  %v829_v2 = vld [vmem:[%s1856_s0 + $0x18] sm:$0xff]  ;;  %s842_s15 = sld [smem:[#allocation2 + $0x1]] }
  0x26   :  { %v834_v3 = vld [vmem:[%s1856_s0 + $0x48] sm:$0xff]  ;;  %v95_v4 = vsub.f32 %v824_v1, %v819_v0  ;;  %s840_s14 = sld [smem:[#allocation2]]  ;;  %v550_v6 = vadd.f32 %v824_v1, %v819_v0  ;;  %s846_s16 = sld [smem:[#allocation2 + $0x2]]  ;;  %v868_v10 = vld [vmem:[%s1856_s0 + $0x20] sm:$0xff]  ;;  %v873_v11 = vld [vmem:[%s1856_s0 + $0x38] sm:$0xff]  ;;  %vm72_vm3 = vcmp.ge.f32.partialorder %v819_v0, 0.0 }
  0x27   :  { %v101_v5 = vsub.f32 %v834_v3, %v829_v2  ;;  %s848_s17 = sld [smem:[#allocation2 + $0x3]]  ;;  %s852_s18 = sld [smem:[#allocation2 + $0x4]]  ;;  %v859_v9 = vld [vmem:[%s1856_s0 + $0x8] sm:$0xff]  ;;  %v884_v13 = vld [vmem:[%s1856_s0 + $0x50] sm:$0xff]  ;;  %v888_v14 = vadd.f32 %v834_v3, %v829_v2  ;;  %vm75_vm4 = vcmp.ge.f32.partialorder %v829_v2, 0.0  ;;  %vm76_vm9 = vcmp.ge.f32.partialorder %v868_v10, 0.0 }
  0x28   :  { %v98_v7 = vadd.f32 1.0, %v95_v4  ;;  %s854_s19 = sld [smem:[#allocation2 + $0x5]]  ;;  %s861_s22 = sld [smem:[#allocation2 + $0x6]]  ;;  %v879_v12 = vmul.f32 0.5, %v550_v6  ;;  %v96_v15 = vsub.f32 %v873_v11, %v859_v9  ;;  %v102_v16 = vsub.f32 %v884_v13, %v868_v10 }
  0x29   :  { %v850_v8 = vadd.f32 1.0, %v101_v5  ;;  %s863_s23 = sld [smem:[#allocation2 + $0x7]]  ;;  %s875_s1 = sld [smem:[#allocation2 + $0x8]]  ;;  %1869 = vst [vmem:[#allocation10_spill] sm:$0xff] %v888_v14  ;;  %v900_v17 = vadd.f32 %v873_v11, %v859_v9  ;;  %vm73_vm8 = vcmp.ge.f32.partialorder %v859_v9, 0.0 }
  0x2a   :  { %s877_s27 = sld [smem:[#allocation2 + $0x9]]  ;;  %s890_s30 = sld [smem:[#allocation2 + $0xa]]  ;;  %684 = vrcp.f32 %v98_v7 }
  0x2b   :  { %1868 = vst [vmem:[#allocation9_spill] sm:$0xff] %v850_v8  ;;  %s892_s6 = sld [smem:[#allocation2 + $0xb]]  ;;  %v902_v18 = vstv %s70_s9  ;;  %v905_v19 = vmul.f32 %v850_v8, %v98_v7  ;;  %v911_v21 = vstv %s842_s15  ;;  %s925_s3 = sld [smem:[#allocation2 + $0xc]]  ;;  %v775_v8 = vmov 0  }
  0x2c   :  { %v908_v20 = vstv %s840_s14  ;;  %s114_s7 = ssub.f32 %s846_s16, %s840_s14  ;;  %v916_v22 = vstv %s846_s16  ;;  %v143_v25 = vmax.f32 %v829_v2, %v911_v21  ;;  %s939_s9 = sld [smem:[#allocation2 + $0xd]]  ;;  %vm82_vm7 = vcmp.lt.f32.partialorder %v824_v1, %v902_v18 }
  0x2d   :  { %v129_v23 = vmax.f32 %v819_v0, %v908_v20  ;;  %v921_v24 = vstv %s848_s17  ;;  %s116_s8 = ssub.f32 %s848_s17, %s842_s15  ;;  %v125_v26 = vmin.f32 %v824_v1, %v916_v22  ;;  %v934_v28 = vstv %s852_s18  ;;  %s953_s11 = sld [smem:[#allocation2 + $0xe]] }
  0x2e   :  { %v139_v27 = vmin.f32 %v834_v3, %v921_v24  ;;  %v937_v29 = vstv %s854_s19  ;;  %s941_s10 = sadd.f32 1.0, %s114_s7  ;;  %v944_v30 = vstv %s861_s22  ;;  %v207_v31 = vmax.f32 %v819_v0, %v934_v28  ;;  %s961_s13 = sld [smem:[#allocation2 + $0xf]] }
  0x2f   :  { %v949_v32 = vstv %s863_s23  ;;  %v221_v33 = vmax.f32 %v829_v2, %v937_v29  ;;  %s955_s12 = sadd.f32 1.0, %s116_s8  ;;  %v132_v34 = vsub.f32 %v125_v26, %v129_v23  ;;  %v203_v36 = vmin.f32 %v824_v1, %v944_v30 }
  0x30   :  { %v146_v35 = vsub.f32 %v139_v27, %v143_v25  ;;  %v217_v37 = vmin.f32 %v834_v3, %v949_v32  ;;  %p118_p1 = scmp.gt.f32.partialorder %s941_s10, 0.0  ;;  %s192_s20 = ssub.f32 %s861_s22, %s852_s18  ;;  %v967_v38 = vstv %s890_s30  ;;  %v970_v39 = vstv %s875_s1 }
  0x31   :  { %v973_v40 = vstv %s892_s6  ;;  %v976_v41 = vstv %s877_s27  ;;  %p119_p2 = scmp.gt.f32.partialorder %s955_s12, 0.0  ;;  %s122_s21 = smul.f32 %s955_s12, %s941_s10  ;;  %v135_v42 = vadd.f32 1.0, %v132_v34  ;;  %v210_v44 = vsub.f32 %v203_v36, %v207_v31 }
  0x32   :  { %v149_v43 = vadd.f32 1.0, %v146_v35  ;;  %v224_v45 = vsub.f32 %v217_v37, %v221_v33  ;;  %s981_s24 = sadd.f32 1.0, %s192_s20  ;;  %v287_v46 = vmin.f32 %v824_v1, %v967_v38  ;;  %v291_v47 = vmax.f32 %v819_v0, %v970_v39 }
  0x33   :  { %v301_v48 = vmin.f32 %v834_v3, %v973_v40  ;;  %v305_v49 = vmax.f32 %v829_v2, %v976_v41  ;;  %p120_p3 = pnand %p119_p2, %p118_p1  ;;  %v152_v50 = vmax.f32 %v135_v42, 0.0  ;;  %s194_s25 = ssub.f32 %s863_s23, %s854_s19  ;;  %v213_v52 = vadd.f32 1.0, %v210_v44 }
  0x34   :  { %v155_v51 = vmax.f32 %v149_v43, 0.0  ;;  %v227_v53 = vadd.f32 1.0, %v224_v45  ;;  %v995_v54 = vpop.eup %684  ;;  %s276_s26 = ssub.f32 %s890_s30, %s875_s1  ;;  %v294_v55 = vsub.f32 %v287_v46, %v291_v47  ;;  %v1000_v57 = vstv %s953_s11  ;;  %p196_p4 = scmp.gt.f32.partialorder %s981_s24, 0.0 }
  0x35   :  { %v308_v56 = vsub.f32 %v301_v48, %v305_v49  ;;  %v1003_v58 = vstv %s925_s3  ;;  %s1909_s21 = smov (%p120_p3, %s122_s21), 0.0  ;;  %v230_v60 = vmax.f32 %v213_v52, 0.0  ;;  %v371_v62 = vmin.f32 %v824_v1, %v1000_v57  ;;  %s1009_s2 = sadd.f32 1.0, %s194_s25 }
  0x36   :  { %v1005_v59 = vmul.f32 %v155_v51, %v152_v50  ;;  %v233_v61 = vmax.f32 %v227_v53, 0.0  ;;  %v297_v63 = vadd.f32 1.0, %v294_v55  ;;  %v375_v5 = vmax.f32 %v819_v0, %v1003_v58  ;;  %s1019_s28 = sadd.f32 1.0, %s276_s26  ;;  %s1083_s25 = sld [smem:[#allocation4 + $0x1]] }
  0x37   :  { %v311_v4 = vadd.f32 1.0, %v308_v56  ;;  %v1015_v6 = vstv %s961_s13  ;;  %v1017_v7 = vstv %s1909_s21  ;;  %v1022_v23 = vstv %s939_s9  ;;  %p197_p5 = scmp.gt.f32.partialorder %s1009_s2, 0.0  ;;  %s200_s29 = smul.f32 %s1009_s2, %s981_s24 }
  0x38   :  { %v1027_v25 = vadd.f32 1.0, %v96_v15  ;;  %v1032_v26 = vadd.f32 1.0, %v102_v16  ;;  %v162_v27 = vadd.f32 %v1017_v7, %v905_v19  ;;  %v314_v31 = vmax.f32 %v297_v63, 0.0  ;;  %s278_s7 = ssub.f32 %s892_s6, %s877_s27  ;;  %p280_p7 = scmp.gt.f32.partialorder %s1019_s28, 0.0 }
  0x39   :  { %v317_v33 = vmax.f32 %v311_v4, 0.0  ;;  %v378_v34 = vsub.f32 %v371_v62, %v375_v5  ;;  %v385_v15 = vmin.f32 %v834_v3, %v1015_v6  ;;  %v389_v35 = vmax.f32 %v829_v2, %v1022_v23  ;;  %p198_p6 = pnand %p197_p5, %p196_p4  ;;  %s360_s8 = ssub.f32 %s953_s11, %s925_s3 }
  0x3a   :  { %1870 = vst [vmem:[#allocation11_spill] sm:$0xff] %v1032_v26  ;;  %v126_v16 = vmin.f32 %v873_v11, %v916_v22  ;;  %v130_v36 = vmax.f32 %v859_v9, %v908_v20  ;;  %v165_v37 = vsub.f32 %v162_v27, %v1005_v59  ;;  %v1052_v42 = vmul.f32 %v233_v61, %v230_v60  ;;  %s1061_s20 = sadd.f32 1.0, %s278_s7 }
  0x3b   :  { %v140_v43 = vmin.f32 %v884_v13, %v921_v24  ;;  %v1059_v44 = vmul.f32 0.5, %v900_v17  ;;  %v1064_v45 = vmul.f32 %v317_v33, %v314_v31  ;;  %v1068_v46 = vmul.f32 %v1032_v26, %v1027_v25  ;;  %s1911_s29 = smov (%p198_p6, %s200_s29), 0.0  ;;  %s1087_s26 = sadd.f32 1.0, %s360_s8 }
  0x3c   :  { %v133_v47 = vsub.f32 %v126_v16, %v130_v36  ;;  %v144_v48 = vmax.f32 %v868_v10, %v911_v21  ;;  %686 = vrcp.f32 %v165_v37  ;;  %v1072_v49 = vadd.f32 1.0, %v378_v34  ;;  %p281_p8 = scmp.gt.f32.partialorder %s1061_s20, 0.0  ;;  %s284_s21 = smul.f32 %s1061_s20, %s1019_s28 }
  0x3d   :  { %1871 = vst [vmem:[#allocation12_spill] sm:$0xff] %v1059_v44  ;;  %v204_v17 = vmin.f32 %v873_v11, %v944_v30  ;;  %v208_v50 = vmax.f32 %v859_v9, %v934_v28  ;;  %v392_v51 = vsub.f32 %v385_v15, %v389_v35  ;;  %v218_v55 = vmin.f32 %v884_v13, %v949_v32  ;;  %s362_s7 = ssub.f32 %s961_s13, %s939_s9  ;;  %p364_p10 = scmp.gt.f32.partialorder %s1087_s26, 0.0 }
  0x3e   :  { %v136_v52 = vadd.f32 1.0, %v133_v47  ;;  %v147_v53 = vsub.f32 %v140_v43, %v144_v48  ;;  %v1085_v56 = vstv %s1911_s29  ;;  %v222_v61 = vmax.f32 %v868_v10, %v937_v29  ;;  %p282_p9 = pnand %p281_p8, %p280_p7  ;;  %s443_s29 = sadd.f32 %s846_s16, %s840_s14 }
  0x3f   :  { %v211_v60 = vsub.f32 %v204_v17, %v208_v50  ;;  %v288_v62 = vmin.f32 %v873_v11, %v967_v38  ;;  %v240_v63 = vadd.f32 %v1085_v56, %v905_v19  ;;  %v163_v27 = vadd.f32 %v1017_v7, %v1068_v46  ;;  %s1111_s8 = sadd.f32 1.0, %s362_s7 }
  0x40   :  { %v150_v4 = vadd.f32 1.0, %v147_v53  ;;  %v153_v5 = vmax.f32 %v136_v52, 0.0  ;;  %v398_v31 = vmax.f32 %v1072_v49, 0.0  ;;  %v225_v34 = vsub.f32 %v218_v55, %v222_v61  ;;  %s1913_s21 = smov (%p282_p9, %s284_s21), 0.0  ;;  %s1118_s14 = smul.f32 0.5, %s443_s29 }
  0x41   :  { %v214_v33 = vadd.f32 1.0, %v211_v60  ;;  %v292_v15 = vmax.f32 %v859_v9, %v970_v39  ;;  %v243_v35 = vsub.f32 %v240_v63, %v1052_v42  ;;  %v395_v16 = vadd.f32 1.0, %v392_v51  ;;  %s466_s16 = sadd.f32 %s861_s22, %s852_s18  ;;  %p365_p11 = scmp.gt.f32.partialorder %s1111_s8, 0.0 }
  0x42   :  { %v156_v36 = vmax.f32 %v150_v4, 0.0  ;;  %v302_v37 = vmin.f32 %v884_v13, %v973_v40  ;;  %v228_v43 = vadd.f32 1.0, %v225_v34  ;;  %v306_v49 = vmax.f32 %v868_v10, %v976_v41  ;;  %s368_s7 = smul.f32 %s1111_s8, %s1087_s26  ;;  %s489_s22 = sadd.f32 %s890_s30, %s875_s1 }
  0x43   :  { %v231_v47 = vmax.f32 %v214_v33, 0.0  ;;  %v295_v48 = vsub.f32 %v288_v62, %v292_v15  ;;  %688 = vrcp.f32 %v243_v35  ;;  %v1116_v17 = vstv %s1913_s21  ;;  %s1133_s18 = smul.f32 0.5, %s466_s16  ;;  %p366_p12 = pnand %p365_p11, %p364_p10 }
  0x44   :  { %v1122_v50 = vmul.f32 %v156_v36, %v153_v5  ;;  %v241_v51 = vadd.f32 %v1085_v56, %v1068_v46  ;;  %v324_v52 = vadd.f32 %v1116_v17, %v905_v19  ;;  %v234_v53 = vmax.f32 %v228_v43, 0.0  ;;  %s512_s21 = sadd.f32 %s953_s11, %s925_s3  ;;  %s490_s1 = smul.f32 0.5, %s489_s22 }
  0x45   :  { %v298_v55 = vadd.f32 1.0, %v295_v48  ;;  %v372_v60 = vmin.f32 %v873_v11, %v1000_v57  ;;  %v401_v61 = vmax.f32 %v395_v16, 0.0  ;;  %v309_v63 = vsub.f32 %v302_v37, %v306_v49  ;;  %s1915_s7 = smov (%p366_p12, %s368_s7), 0.0  ;;  %s472_s22 = sadd.f32 %s863_s23, %s854_s19 }
  0x46   :  { %v166_v62 = vsub.f32 %v163_v27, %v1122_v50  ;;  %v376_v4 = vmax.f32 %v859_v9, %v1003_v58  ;;  %v687_v5 = vpop.eup %686  ;;  %v1141_v33 = vstv %s1083_s25  ;;  %v327_v34 = vsub.f32 %v324_v52, %v1064_v45  ;;  %s513_s30 = smul.f32 0.5, %s512_s21 }
  0x47   :  { %v1150_v15 = vmul.f32 %v234_v53, %v231_v47  ;;  %v315_v35 = vmax.f32 %v298_v55, 0.0  ;;  %v1153_v16 = vmul.f32 %v687_v5, %v1005_v59  ;;  %v312_v27 = vadd.f32 1.0, %v309_v63  ;;  %v1186_v5 = vld [vmem:[%s1856_s0 + $0x10] sm:$0xff]  ;;  %s473_s23 = smul.f32 0.5, %s472_s22 }
  0x48   :  { %690 = vrcp.f32 %v166_v62  ;;  %v386_v36 = vmin.f32 %v884_v13, %v1015_v6  ;;  %v379_v43 = vsub.f32 %v372_v60, %v376_v4  ;;  %v390_v47 = vmax.f32 %v868_v10, %v1022_v23 }
  0x49   :  { %1872 = vst [vmem:[#allocation13_spill] sm:$0xff] %v1153_v16  ;;  %692 = vrcp.f32 %v327_v34  ;;  %v244_v37 = vsub.f32 %v241_v51, %v1150_v15  ;;  %vm174_vm0 = vcmp.gt.f32.partialorder %v1153_v16, -inf  ;;  %v1161_v59 = vmul.f32 %v401_v61, %v398_v31 }
  0x4a   :  { %v318_v48 = vmax.f32 %v312_v27, 0.0  ;;  %v325_v49 = vadd.f32 %v1116_v17, %v1068_v46  ;;  %v1165_v52 = vstv %s1915_s7  ;;  %v1168_v53 = vstv %s1118_s14 }
  0x4b   :  { %694 = vrcp.f32 %v244_v37  ;;  %v382_v55 = vadd.f32 1.0, %v379_v43  ;;  %v408_v51 = vadd.f32 %v1165_v52, %v905_v19  ;;  %v1173_v60 = vstv %s1133_s18  ;;  %v1191_v19 = vld [vmem:[%s1856_s0 + $0x40] sm:$0xff]  ;;  %v1203_v43 = vld [vmem:[%s1856_s0 + $0x58] sm:$0xff] }
  0x4c   :  { %v1175_v62 = vmul.f32 %v318_v48, %v315_v35  ;;  %v393_v31 = vsub.f32 %v386_v36, %v390_v47  ;;  %v177_v61 = vsel %vm174_vm0, %v1153_v16, -inf  ;;  %v1178_v63 = vstv %s490_s1 }
  0x4d   :  { %v1180_v4 = vstv %s513_s30  ;;  %696 = vrcp.f32 %v1027_v25  ;;  %v689_v34 = vpop.eup %688  ;;  %v411_v35 = vsub.f32 %v408_v51, %v1161_v59  ;;  %v399_v37 = vmax.f32 %v382_v55, 0.0  ;;  %v1198_v25 = vld [vmem:[%s1856_s0 + $0x28] sm:$0xff]  ;;  %s449_s0 = sadd.f32 %s848_s17, %s842_s15 }
  0x4e   :  { %v328_v27 = vsub.f32 %v325_v49, %v1175_v62  ;;  %v396_v36 = vadd.f32 1.0, %v393_v31  ;;  %v1206_v47 = vmul.f32 %v689_v34, %v1052_v42  ;;  %v409_v48 = vadd.f32 %v1165_v52, %v1068_v46  ;;  %s495_s15 = sadd.f32 %s892_s6, %s877_s27 }
  0x4f   :  { %v97_v49 = vsub.f32 %v1191_v19, %v1186_v5  ;;  %v103_v55 = vsub.f32 %v1203_v43, %v1198_v25  ;;  %698 = vrcp.f32 %v411_v35  ;;  %v127_v31 = vmin.f32 %v1191_v19, %v916_v22  ;;  %s518_s17 = sadd.f32 %s961_s13, %s939_s9  ;;  %s450_s19 = smul.f32 0.5, %s449_s0 }
  0x50   :  { %v402_v51 = vmax.f32 %v396_v36, 0.0  ;;  %v131_v16 = vmax.f32 %v1186_v5, %v908_v20  ;;  %vm252_vm1 = vcmp.gt.f32.partialorder %v1206_v47, %v177_v61  ;;  %700 = vrcp.f32 %v328_v27  ;;  %s496_s27 = smul.f32 0.5, %s495_s15 }
  0x51   :  { %v1219_v42 = vadd.f32 1.0, %v97_v49  ;;  %v1221_v46 = vadd.f32 1.0, %v103_v55  ;;  %v255_v26 = vsel %vm252_vm1, %v1206_v47, %v177_v61  ;;  %v258_v35 = vsel %vm252_vm1, 1, %v775_v8  ;;  %s519_s6 = smul.f32 0.5, %s518_s17 }
  0x52   :  { %v691_v34 = vpop.eup %690  ;;  %v1225_v36 = vmul.f32 %v402_v51, %v399_v37  ;;  %v134_v14 = vsub.f32 %v127_v31, %v131_v16  ;;  %v141_v27 = vmin.f32 %v1203_v43, %v921_v24  ;;  %v145_v61 = vmax.f32 %v1198_v25, %v911_v21 }
  0x53   :  { %v693_v22 = vpop.eup %692  ;;  %v1228_v44 = vmul.f32 %v691_v34, %v1122_v50  ;;  %v1232_v20 = vmul.f32 %v1221_v46, %v1219_v42  ;;  %v205_v50 = vmin.f32 %v1191_v19, %v944_v30  ;;  %v209_v24 = vmax.f32 %v1186_v5, %v934_v28 }
  0x54   :  { %v1239_v49 = vmul.f32 %v693_v22, %v1064_v45  ;;  %v412_v37 = vsub.f32 %v409_v48, %v1225_v36  ;;  %v137_v16 = vadd.f32 1.0, %v134_v14  ;;  %v148_v51 = vsub.f32 %v141_v27, %v145_v61 }
  0x55   :  { %v695_v55 = vpop.eup %694  ;;  %vm175_vm2 = vcmp.gt.f32.partialorder %v1228_v44, -inf  ;;  %v164_v31 = vadd.f32 %v1017_v7, %v1232_v20  ;;  %v212_v34 = vsub.f32 %v205_v50, %v209_v24  ;;  %v219_v22 = vmin.f32 %v1203_v43, %v949_v32 }
  0x56   :  { %vm336_vm5 = vcmp.gt.f32.partialorder %v1239_v49, %v255_v26  ;;  %v178_v14 = vsel %vm175_vm2, %v1228_v44, -inf  ;;  %v1254_v21 = vmul.f32 %v695_v55, %v1150_v15  ;;  %702 = vrcp.f32 %v412_v37  ;;  %vm1323_vm2 = vmand %vm72_vm3, %vm75_vm4 }
  0x57   :  { %v1256_v30 = vpop.eup %696  ;;  %v1259_v45 = vsel %vm336_vm5, %v1239_v49, %v255_v26  ;;  %v342_v7 = vsel %vm336_vm5, 2, %v258_v35  ;;  %v151_v48 = vadd.f32 1.0, %v148_v51  ;;  %v154_v28 = vmax.f32 %v137_v16, 0.0  ;;  %vm1362_vm5 = vmand %vm1323_vm2, %vm82_vm7 }
  0x58   :  { %vm253_vm6 = vcmp.gt.f32.partialorder %v1254_v21, %v178_v14  ;;  %v223_v27 = vmax.f32 %v1198_v25, %v937_v29  ;;  %v1272_v35 = vadd.f32 %v1085_v56, %v1232_v20  ;;  %v215_v16 = vadd.f32 1.0, %v212_v34 }
  0x59   :  { %v256_v15 = vsel %vm253_vm6, %v1254_v21, %v178_v14  ;;  %v259_v26 = vsel %vm253_vm6, 1, %v775_v8  ;;  %v157_v61 = vmax.f32 %v151_v48, 0.0  ;;  %v699_v37 = vpop.eup %698  ;;  %v289_v32 = vmin.f32 %v1191_v19, %v967_v38 }
  0x5a   :  { %v226_v50 = vsub.f32 %v219_v22, %v223_v27  ;;  %v293_v29 = vmax.f32 %v1186_v5, %v970_v39  ;;  %v701_v55 = vpop.eup %700  ;;  %v1279_v51 = vmul.f32 %v699_v37, %v1161_v59  ;;  %v303_v56 = vmin.f32 %v1203_v43, %v973_v40 }
  0x5b   :  { %v1283_v24 = vmul.f32 %v157_v61, %v154_v28  ;;  %v307_v14 = vmax.f32 %v1198_v25, %v976_v41  ;;  %vm89_vm10 = vcmp.lt.f32.partialorder %v834_v3, %v1141_v33  ;;  %v1292_v38 = vmul.f32 %v701_v55, %v1175_v62 }
  0x5c   :  { %v229_v39 = vadd.f32 1.0, %v226_v50  ;;  %v232_v59 = vmax.f32 %v215_v16, 0.0  ;;  %v296_v48 = vsub.f32 %v289_v32, %v293_v29  ;;  %vm1866_vm11 = vcmp.gt.f32.partialorder %v1279_v51, %v1259_v45 }
  0x5d   :  { %v167_v28 = vsub.f32 %v164_v31, %v1283_v24  ;;  %v310_v34 = vsub.f32 %v303_v56, %v307_v14  ;;  %v1299_v40 = vadd.f32 %v1116_v17, %v1232_v20  ;;  %v1304_v41 = vsel %vm1866_vm11, 3, %v342_v7  ;;  %vm1399_vm11 = vmand %vm1362_vm5, %vm89_vm10 }
  0x5e   :  { %vm337_vm12 = vcmp.gt.f32.partialorder %v1292_v38, %v256_v15  ;;  %v235_v62 = vmax.f32 %v229_v39, 0.0  ;;  %v299_v22 = vadd.f32 1.0, %v296_v48  ;;  %vm440_vm13 = vcmp.eq.s32.totalorder %v1304_v41, 0 }
  0x5f   :  { %vm463_vm14 = vcmp.eq.s32.totalorder %v1304_v41, 1  ;;  %vm486_vm15 = vcmp.eq.s32.totalorder %v1304_v41, 2  ;;  %vm509_vm0 = vcmp.eq.s32.totalorder %v1304_v41, 3  ;;  %vm83_vm1 = vcmp.lt.f32.partialorder %v873_v11, %v902_v18 }
  0x60   :  { %v703_v17 = vpop.eup %702  ;;  %v446_v31 = vsel %vm440_vm13, %v1168_v53, 0.0  ;;  %v1317_v7 = vsel %vm337_vm12, %v1292_v38, %v256_v15  ;;  %v343_v27 = vsel %vm337_vm12, 2, %v259_v26  ;;  %704 = vrcp.f32 %v167_v28 }
  0x61   :  { %v469_v37 = vsel %vm463_vm14, %v1173_v60, %v446_v31  ;;  %v1331_v16 = vmul.f32 %v703_v17, %v1225_v36  ;;  %v1333_v15 = vmul.f32 %v235_v62, %v232_v59  ;;  %v313_v26 = vadd.f32 1.0, %v310_v34 }
  0x62   :  { %v492_v0 = vsel %vm486_vm15, %v1178_v63, %v469_v37  ;;  %vm90_vm3 = vcmp.lt.f32.partialorder %v884_v13, %v1141_v33  ;;  %v316_v2 = vmax.f32 %v299_v22, 0.0  ;;  %v373_v50 = vmin.f32 %v1191_v19, %v1000_v57  ;;  %v1884_v57 = vld [vmem:[#allocation10_spill] sm:$0xff] }
  0x63   :  { %v377_v36 = vmax.f32 %v1186_v5, %v1003_v58  ;;  %v515_v32 = vsel %vm509_vm0, %v1180_v4, %v492_v0  ;;  %vm1865_vm4 = vcmp.gt.f32.partialorder %v1331_v16, %v1317_v7  ;;  %v245_v29 = vsub.f32 %v1272_v35, %v1333_v15 }
  0x64   :  { %v319_v55 = vmax.f32 %v313_v26, 0.0  ;;  %v568_v58 = vsub.f32 %v515_v32, %v879_v12  ;;  %v1370_v56 = vsel %vm1865_vm4, 3, %v343_v27  ;;  %v387_v35 = vmin.f32 %v1203_v43, %v1015_v6  ;;  %vm1385_vm4 = vmand %vm73_vm8, %vm76_vm9  ;;  %v1885_v12 = vld [vmem:[#allocation9_spill] sm:$0xff] }
  0x65   :  { %v380_v14 = vsub.f32 %v373_v50, %v377_v36  ;;  %vm441_vm6 = vcmp.eq.s32.totalorder %v1370_v56, 0  ;;  %vm464_vm12 = vcmp.eq.s32.totalorder %v1370_v56, 1  ;;  %vm487_vm7 = vcmp.eq.s32.totalorder %v1370_v56, 2  ;;  %vm86_vm8 = vmand %vm1385_vm4, %vm83_vm1 }
  0x66   :  { %vm510_vm2 = vcmp.eq.s32.totalorder %v1370_v56, 3  ;;  %v571_v1 = vmul.f32 %v995_v54, %v568_v58  ;;  %v447_v6 = vsel %vm441_vm6, %v1168_v53, 0.0  ;;  %706 = vrcp.f32 %v245_v29  ;;  %vm1455_vm9 = vmand %vm86_vm8, %vm90_vm3 }
  0x67   :  { %v1392_v39 = vmul.f32 %v319_v55, %v316_v2  ;;  %v470_v9 = vsel %vm464_vm12, %v1173_v60, %v447_v6  ;;  %v383_v48 = vadd.f32 1.0, %v380_v14  ;;  %v391_v28 = vmax.f32 %v1198_v25, %v1022_v23 }
  0x68   :  { %v410_v34 = vadd.f32 %v1165_v52, %v1232_v20  ;;  %v598_v3 = vsel %vm1399_vm11, %v571_v1, 0.0  ;;  %v493_v62 = vsel %vm487_vm7, %v1178_v63, %v470_v9  ;;  %v552_v17 = vadd.f32 %v1191_v19, %v1186_v5 }
  0x69   :  { %v329_v22 = vsub.f32 %v1299_v40, %v1392_v39  ;;  %601 = vst [vmem:[%s1860_s4] sm:$0xff] %v598_v3  ;;  %v516_v23 = vsel %vm510_vm2, %v1180_v4, %v493_v62  ;;  %v394_v52 = vsub.f32 %v387_v35, %v391_v28  ;;  %v400_v20 = vmax.f32 %v383_v48, 0.0  ;;  %v1881_v40 = vld [vmem:[#allocation12_spill] sm:$0xff] }
  0x6a   :  { %708 = vrcp.f32 %v1219_v42  ;;  %v705_v31 = vpop.eup %704  ;;  %v569_v27 = vsub.f32 %v516_v23, %v1881_v40  ;;  %v1432_v61 = vmul.f32 0.5, %v552_v17  ;;  %v1434_v37 = vstv %s450_s19 }
  0x6b   :  { %710 = vrcp.f32 %v329_v22  ;;  %v1437_v26 = vmul.f32 %v705_v31, %v1283_v24  ;;  %v397_v0 = vadd.f32 1.0, %v394_v52  ;;  %v452_v42 = vsel %vm440_vm13, %v1434_v37, 0.0  ;;  %v1886_v22 = vld [vmem:[#allocation11_spill] sm:$0xff] }
  0x6c   :  { %v1442_v2 = vstv %s473_s23  ;;  %v572_v11 = vmul.f32 %v1256_v30, %v569_v27  ;;  %v1448_v36 = vstv %s496_s27  ;;  %v1450_v32 = vstv %s519_s6 }
  0x6d   :  { %v475_v50 = vsel %vm463_vm14, %v1442_v2, %v452_v42  ;;  %vm176_vm10 = vcmp.gt.f32.partialorder %v1437_v26, -inf  ;;  %v403_v29 = vmax.f32 %v397_v0, 0.0  ;;  %v559_v58 = vmul.f32 0.5, %v1884_v57 }
  0x6e   :  { %v498_v55 = vsel %vm486_vm15, %v1448_v36, %v475_v50  ;;  %v599_v14 = vsel %vm1455_vm9, %v572_v11, 0.0  ;;  %v179_v35 = vsel %vm176_vm10, %v1437_v26, -inf  ;;  %712 = vrcp.f32 %v1885_v12 }
  0x6f   :  { %v521_v1 = vsel %vm509_vm0, %v1450_v32, %v498_v55  ;;  %602 = vst [vmem:[%s1860_s4 + $0x8] sm:$0xff] %v599_v14  ;;  %v1474_v6 = vmul.f32 %v403_v29, %v400_v20  ;;  %v453_v48 = vsel %vm441_vm6, %v1434_v37, 0.0  ;;  %v557_v28 = vadd.f32 %v884_v13, %v868_v10 }
  0x70   :  { %v574_v9 = vsub.f32 %v521_v1, %v559_v58  ;;  %v707_v3 = vpop.eup %706  ;;  %v476_v62 = vsel %vm464_vm12, %v1442_v2, %v453_v48  ;;  %714 = vrcp.f32 %v1886_v22  ;;  %v558_v17 = vadd.f32 %v1203_v43, %v1198_v25 }
  0x71   :  { %v1488_v23 = vstv %s941_s10  ;;  %v1491_v52 = vmul.f32 %v707_v3, %v1333_v15  ;;  %v413_v20 = vsub.f32 %v410_v34, %v1474_v6  ;;  %v499_v10 = vsel %vm487_vm7, %v1448_v36, %v476_v62  ;;  %s1520_s10 = sld [smem:[#allocation6]] }
  0x72   :  { %v560_v13 = vmul.f32 0.5, %v557_v28  ;;  %v522_v31 = vsel %vm510_vm2, %v1450_v32, %v499_v10  ;;  %v1500_v40 = vmul.f32 0.5, %v558_v17  ;;  %716 = vrcp.f32 %v1221_v46 }
  0x73   :  { %v456_v15 = vsel %vm440_vm13, %v1488_v23, 1.0  ;;  %vm254_vm1 = vcmp.gt.f32.partialorder %v1491_v52, %v179_v35  ;;  %718 = vrcp.f32 %v413_v20  ;;  %v1510_v0 = vstv %s981_s24  ;;  %s1534_s24 = sld [smem:[#allocation6 + $0x1]] }
  0x74   :  { %v1506_v34 = vpop.eup %708  ;;  %v575_v27 = vsub.f32 %v522_v31, %v560_v13  ;;  %v257_v11 = vsel %vm254_vm1, %v1491_v52, %v179_v35  ;;  %v260_v50 = vsel %vm254_vm1, 1, %v775_v8  ;;  %v479_v46 = vsel %vm463_vm14, %v1510_v0, %v456_v15 }
  0x75   :  { %v711_v42 = vpop.eup %710  ;;  %v1518_v29 = vstv %s1019_s28  ;;  %v1529_v58 = vstv %s1087_s26  ;;  %v457_v8 = vsel %vm441_vm6, %v1488_v23, 1.0  ;;  %v1543_v35 = vstv %s955_s12  ;;  %s1556_s28 = sld [smem:[#allocation6 + $0x2]]  ;;  %s1567_s12 = sld [smem:[#allocation6 + $0x3]] }
  0x76   :  { %v1523_v55 = vmul.f32 %v711_v42, %v1392_v39  ;;  %v502_v57 = vsel %vm486_vm15, %v1518_v29, %v479_v46  ;;  %v480_v39 = vsel %vm464_vm12, %v1510_v0, %v457_v8  ;;  %v1546_v1 = vstv %s1009_s2 }
  0x77   :  { %v525_v14 = vsel %vm509_vm0, %v1529_v58, %v502_v57  ;;  %v503_v48 = vsel %vm487_vm7, %v1518_v29, %v480_v39  ;;  %v460_v28 = vsel %vm440_vm13, %v1543_v35, 1.0  ;;  %vm74_vm13 = vcmp.ge.f32.partialorder %v1186_v5, 0.0 }
  0x78   :  { %vm338_vm3 = vcmp.gt.f32.partialorder %v1523_v55, %v257_v11  ;;  %v580_v12 = vmul.f32 %v995_v54, %v525_v14  ;;  %v713_v3 = vpop.eup %712  ;;  %v526_v54 = vsel %vm510_vm2, %v1529_v58, %v503_v48  ;;  %v483_v17 = vsel %vm463_vm14, %v1546_v1, %v460_v28 }
  0x79   :  { %v1559_v62 = vsel %vm338_vm3, %v1523_v55, %v257_v11  ;;  %v344_v22 = vsel %vm338_vm3, 2, %v260_v50  ;;  %vm77_vm4 = vcmp.ge.f32.partialorder %v1198_v25, 0.0  ;;  %v577_v20 = vmul.f32 %v713_v3, %v574_v9  ;;  %v1887_v50 = vld [vmem:[#allocation13_spill] sm:$0xff] }
  0x7a   :  { %720 = vlog2.f32 %v580_v12  ;;  %v581_v10 = vmul.f32 %v1256_v30, %v526_v54  ;;  %v1573_v13 = vstv %s1061_s20  ;;  %v715_v31 = vpop.eup %714  ;;  %v1579_v42 = vstv %s1111_s8  ;;  %vm1684_vm8 = vmand %vm74_vm13, %vm77_vm4 }
  0x7b   :  { %v506_v15 = vsel %vm486_vm15, %v1573_v13, %v483_v17  ;;  %v461_v11 = vsel %vm441_vm6, %v1543_v35, 1.0  ;;  %v180_v9 = vsel %vm1399_vm11, %v1887_v50, -1.0  ;;  %v604_v30 = vsel %vm1399_vm11, %v577_v20, 0.0 }
  0x7c   :  { %v578_v46 = vmul.f32 %v715_v31, %v575_v27  ;;  %722 = vlog2.f32 %v581_v10  ;;  %v529_v57 = vsel %vm509_vm0, %v1579_v42, %v506_v15  ;;  %v1592_v8 = vpop.eup %716  ;;  %vm84_vm14 = vcmp.lt.f32.partialorder %v1191_v19, %v902_v18  ;;  %670 = vst [vmem:[%s1860_s4 + $0x18] sm:$0xff] %v604_v30 }
  0x7d   :  { %v589_v14 = vmul.f32 %v713_v3, %v529_v57  ;;  %v484_v39 = vsel %vm464_vm12, %v1546_v1, %v461_v11  ;;  %v1603_v27 = vstv %s1520_s10  ;;  %v261_v41 = vsel %vm1399_vm11, %v1206_v47, -1.0  ;;  %v719_v12 = vpop.eup %718  ;;  %vm1724_vm4 = vmand %vm1684_vm8, %vm84_vm14 }
  0x7e   :  { %v605_v48 = vsel %vm1455_vm9, %v578_v46, 0.0  ;;  %v507_v28 = vsel %vm487_vm7, %v1573_v13, %v484_v39  ;;  %vm1614_vm15 = vcmp.eq.f32.partialorder %v180_v9, %v1603_v27  ;;  %v1619_v54 = vstv %s1534_s24 }
  0x7f   :  { %v1622_v17 = vmul.f32 %v719_v12, %v1474_v6  ;;  %671 = vst [vmem:[%s1860_s4 + $0x20] sm:$0xff] %v605_v48  ;;  %724 = vlog2.f32 %v589_v14  ;;  %v530_v47 = vsel %vm510_vm2, %v1579_v42, %v507_v28  ;;  %vm1631_vm0 = vcmp.eq.f32.partialorder %v261_v41, %v1619_v54 }
  0x80   :  { %vm91_vm5 = vcmp.lt.f32.partialorder %v1203_v43, %v1141_v33  ;;  %v590_v10 = vmul.f32 %v715_v31, %v530_v47  ;;  %v345_v6 = vsel %vm1399_vm11, %v1239_v49, -1.0  ;;  %v1641_v15 = vstv %s1556_s28 }
  0x81   :  { %vm1892_vm6 = vcmp.gt.f32.partialorder %v1279_v51, %v1259_v45  ;;  %vm1867_vm12 = vcmp.gt.f32.partialorder %v1622_v17, %v1559_v62  ;;  %vm1653_vm7 = vcmp.eq.f32.partialorder %v345_v6, %v1641_v15  ;;  %v429_v49 = vsel %vm1399_vm11, %v1279_v51, -1.0 }
  0x82   :  { %v1648_v56 = vsel %vm1892_vm6, %v1279_v51, %v1259_v45  ;;  %v1661_v31 = vstv %s1567_s12  ;;  %v428_v50 = vsel %vm1867_vm12, 3, %v344_v22  ;;  %726 = vlog2.f32 %v590_v10  ;;  %vm269_vm12 = vmor %vm1614_vm15, %vm1631_vm0 }
  0x83   :  { %vm1667_vm2 = vcmp.eq.f32.partialorder %v429_v49, %v1661_v31  ;;  %vm442_vm10 = vcmp.eq.s32.totalorder %v428_v50, 0  ;;  %vm465_vm1 = vcmp.eq.s32.totalorder %v428_v50, 1  ;;  %vm488_vm3 = vcmp.eq.s32.totalorder %v428_v50, 2  ;;  %vm1715_vm13 = vmor %vm269_vm12, %vm1653_vm7 }
  0x84   :  { %vm511_vm6 = vcmp.eq.s32.totalorder %v428_v50, 3  ;;  %v721_v9 = vpop.eup %720  ;;  %v448_v51 = vsel %vm442_vm10, %v1168_v53, 0.0  ;;  %v454_v30 = vsel %vm442_vm10, %v1434_v37, 0.0  ;;  %v458_v46 = vsel %vm442_vm10, %v1488_v23, 1.0  ;;  %vm437_vm14 = vmor %vm1715_vm13, %vm1667_vm2 }
  0x85   :  { %v462_v22 = vsel %vm442_vm10, %v1543_v35, 1.0  ;;  %v471_v53 = vsel %vm465_vm1, %v1173_v60, %v448_v51  ;;  %v477_v37 = vsel %vm465_vm1, %v1442_v2, %v454_v30  ;;  %v584_v23 = vmul.f32 0.6931472, %v721_v9  ;;  %vm1757_vm15 = vmand %vm1724_vm4, %vm91_vm5 }
  0x86   :  { %v481_v35 = vsel %vm465_vm1, %v1510_v0, %v458_v46  ;;  %v723_v14 = vpop.eup %722  ;;  %v494_v25 = vsel %vm488_vm3, %v1178_v63, %v471_v53  ;;  %v500_v5 = vsel %vm488_vm3, %v1448_v36, %v477_v37  ;;  %v485_v60 = vsel %vm465_vm1, %v1546_v1, %v462_v22 }
  0x87   :  { %v504_v39 = vsel %vm488_vm3, %v1518_v29, %v481_v35  ;;  %v517_v2 = vsel %vm511_vm6, %v1180_v4, %v494_v25  ;;  %v523_v41 = vsel %vm511_vm6, %v1450_v32, %v500_v5  ;;  %v611_v0 = vsel %vm1399_vm11, %v584_v23, 0.0 }
  0x88   :  { %v586_v12 = vmul.f32 0.6931472, %v723_v14  ;;  %v570_v36 = vsub.f32 %v517_v2, %v1432_v61  ;;  %v576_v32 = vsub.f32 %v523_v41, %v1500_v40  ;;  %673 = vst [vmem:[%s1860_s4 + $0x30] sm:$0xff] %v611_v0  ;;  %v527_v29 = vsel %vm511_vm6, %v1529_v58, %v504_v39 }
  0x89   :  { %v508_v18 = vsel %vm488_vm3, %v1573_v13, %v485_v60  ;;  %v725_v19 = vpop.eup %724  ;;  %v582_v48 = vmul.f32 %v1506_v34, %v527_v29  ;;  %vm1905_vm0 = vcmp.lt.f32.partialorder %v1648_v56, 0.3  ;;  %vm541_vm12 = vcmp.ge.f32.partialorder %v1648_v56, 0.7 }
  0x8a   :  { %v612_v1 = vsel %vm1455_vm9, %v586_v12, 0.0  ;;  %v531_v61 = vsel %vm511_vm6, %v1579_v42, %v508_v18  ;;  %v573_v40 = vmul.f32 %v1506_v34, %v570_v36  ;;  %v579_v28 = vmul.f32 %v1592_v8, %v576_v32 }
  0x8b   :  { %674 = vst [vmem:[%s1860_s4 + $0x38] sm:$0xff] %v612_v1  ;;  %v593_v58 = vmul.f32 0.6931472, %v725_v19  ;;  %v591_v13 = vmul.f32 %v1592_v8, %v531_v61  ;;  %728 = vlog2.f32 %v582_v48  ;;  %v776_v42 = vmov 2.0  }
  0x8c   :  { %v535_v3 = vsel %vm1905_vm0, 0.0, %v776_v42  ;;  %v181_v8 = vsel %vm1455_vm9, %v1228_v44, -1.0  ;;  %v727_v47 = vpop.eup %726  ;;  %v600_v33 = vsel %vm1757_vm15, %v573_v40, 0.0  ;;  %v606_v43 = vsel %vm1757_vm15, %v579_v28, 0.0 }
  0x8d   :  { %v618_v20 = vsel %vm1399_vm11, %v593_v58, 0.0  ;;  %730 = vlog2.f32 %v591_v13  ;;  %603 = vst [vmem:[%s1860_s4 + $0x10] sm:$0xff] %v600_v33  ;;  %672 = vst [vmem:[%s1860_s4 + $0x28] sm:$0xff] %v606_v43  ;;  %v595_v44 = vmul.f32 0.6931472, %v727_v47  ;;  %v538_v10 = vsel %vm437_vm14, 1.0, %v535_v3 }
  0x8e   :  { %676 = vst [vmem:[%s1860_s4 + $0x48] sm:$0xff] %v618_v20  ;;  %vm186_vm5 = vcmp.eq.f32.partialorder %v181_v8, %v1603_v27  ;;  %v262_v6 = vsel %vm1455_vm9, %v1254_v21, -1.0  ;;  %v544_v56 = vsel %vm541_vm12, 1.0, %v538_v10  ;;  %v346_v11 = vsel %vm1455_vm9, %v1292_v38, -1.0 }
  0x8f   :  { %vm267_vm7 = vcmp.eq.f32.partialorder %v262_v6, %v1619_v54  ;;  %vm1906_vm8 = vcmp.gt.f32.partialorder %v1331_v16, %v1317_v7  ;;  %v619_v50 = vsel %vm1455_vm9, %v595_v44, 0.0  ;;  %v547_v45 = vsel %vm1399_vm11, %v544_v56, 2.0 }
  0x90   :  { %v424_v49 = vsel %vm1906_vm8, %v1331_v16, %v1317_v7  ;;  %vm270_vm2 = vmor %vm186_vm5, %vm267_vm7  ;;  %vm351_vm10 = vcmp.eq.f32.partialorder %v346_v11, %v1641_v15  ;;  %v430_v21 = vsel %vm1455_vm9, %v1331_v16, -1.0  ;;  %677 = vst [vmem:[%s1860_s4 + $0x50] sm:$0xff] %v619_v50  ;;  %v182_v38 = vsel %vm1757_vm15, %v1437_v26, -1.0 }
  0x91   :  { %625 = vst [vmem:[%s1861_s5] sm:$0xff] %v547_v45  ;;  %vm354_vm1 = vmor %vm270_vm2, %vm351_vm10  ;;  %vm435_vm3 = vcmp.eq.f32.partialorder %v430_v21, %v1661_v31  ;;  %vm533_vm6 = vcmp.lt.f32.partialorder %v424_v49, 0.3  ;;  %vm542_vm11 = vcmp.ge.f32.partialorder %v424_v49, 0.7  ;;  %vm187_vm4 = vcmp.eq.f32.partialorder %v182_v38, %v1603_v27 }
  0x92   :  { %vm438_vm13 = vmor %vm354_vm1, %vm435_vm3  ;;  %v536_v7 = vsel %vm533_vm6, 0.0, %v776_v42  ;;  %v263_v16 = vsel %vm1757_vm15, %v1491_v52, -1.0  ;;  %v347_v59 = vsel %vm1757_vm15, %v1523_v55, -1.0  ;;  %vm1907_vm12 = vcmp.gt.f32.partialorder %v1622_v17, %v1559_v62 }
  0x93   :  { %v539_v9 = vsel %vm438_vm13, 1.0, %v536_v7  ;;  %vm268_vm14 = vcmp.eq.f32.partialorder %v263_v16, %v1619_v54  ;;  %vm352_vm0 = vcmp.eq.f32.partialorder %v347_v59, %v1641_v15  ;;  %v425_v26 = vsel %vm1907_vm12, %v1622_v17, %v1559_v62 }
  0x94   :  { %v545_v27 = vsel %vm542_vm11, 1.0, %v539_v9  ;;  %vm271_vm5 = vmor %vm187_vm4, %vm268_vm14  ;;  %v431_v52 = vsel %vm1757_vm15, %v1622_v17, -1.0  ;;  %vm534_vm7 = vcmp.lt.f32.partialorder %v425_v26, 0.3  ;;  %vm543_vm10 = vcmp.ge.f32.partialorder %v425_v26, 0.7 }
  0x95   :  { %v548_v55 = vsel %vm1455_vm9, %v545_v27, 2.0  ;;  %vm355_vm8 = vmor %vm271_vm5, %vm352_vm0  ;;  %vm436_vm2 = vcmp.eq.f32.partialorder %v431_v52, %v1661_v31  ;;  %v537_v54 = vsel %vm534_vm7, 0.0, %v776_v42  ;;  %v729_v15 = vpop.eup %728 }
  0x96   :  { %626 = vst [vmem:[%s1861_s5 + $0x8] sm:$0xff] %v548_v55  ;;  %vm439_vm1 = vmor %vm355_vm8, %vm436_vm2  ;;  %v588_v51 = vmul.f32 0.6931472, %v729_v15 }
  0x97   :  { %v731_v62 = vpop.eup %730  ;;  %v540_v30 = vsel %vm439_vm1, 1.0, %v537_v54 }
  0x98   :  { %v597_v46 = vmul.f32 0.6931472, %v731_v62  ;;  %v546_v17 = vsel %vm543_vm10, 1.0, %v540_v30  ;;  %v613_v24 = vsel %vm1757_vm15, %v588_v51, 0.0 }
  0x99   :  { %v549_v22 = vsel %vm1757_vm15, %v546_v17, 2.0  ;;  %675 = vst [vmem:[%s1860_s4 + $0x40] sm:$0xff] %v613_v24 }
  0x9a   :  { %v620_v31 = vsel %vm1757_vm15, %v597_v46, 0.0  ;;  %627 = vst [vmem:[%s1861_s5 + $0x10] sm:$0xff] %v549_v22 }
  0x9b   :  { %678 = vst [vmem:[%s1860_s4 + $0x58] sm:$0xff] %v620_v31 }
  0x9c   :  { %636 = vsyncpa [#allocation3], 1 }
  0x9d   :  { %637 = vsyncpa [#allocation5], 1 }

</bundles_post_ra>
